<compile_context>
chip_gen: v5e
topology: v5e:2x2
jax: 0.10.0
libtpu: 0.0.40
codegen_flags: <defaults>
</compile_context>

<pallas_src>
import math

import jax
import jax.numpy as jnp
from jax.experimental import pallas as pl
from jax.experimental.pallas import tpu as pltpu


# Encoder hyper-parameters (representative GeneralConv2DEncoder).
_C1, _C2, _KSIZE, _STRIDE, _PAD = 8, 16, 3, 2, 1
_OUT_DIM_DEFAULT = 32

# GEMM operand dtype.  bf16 is the single biggest lever on all TPU generations
# (f32 accumulation is kept via preferred_element_type inside the kernel).
# Flip to jnp.float32 for bit-closer PyTorch numerics.
COMPUTE_DTYPE = jnp.bfloat16


# ----------------------------------------------------------------------------
# Fused Pallas kernel: main encoder + side encoder + sigmoid-blended output GEMM
# ----------------------------------------------------------------------------
def _gen_side_tuner_kernel(alpha_ref, x_ref,
                           d1m_ref, b1m_ref, d2m_ref, b2m_ref,
                           d1s_ref, b1s_ref, d2s_ref, b2s_ref,
                           wout_ref, blm_ref, bls_ref,
                           o_ref):
    """Fused GenSideTuner forward for one batch tile (TB rows).

    5 lane-dense GEMMs total: 2 folded convs per encoder plus ONE fused output
    GEMM that also realises the sigmoid blend.  All weights are VMEM-resident;
    bias-add / ReLU / blend epilogues stay in f32 (v5e has no bf16 VPU/EUP).
    """

    def mm(act, w_ref):
        # Cast activations to the weight dtype only at the MXU boundary;
        # always accumulate in f32.
        return jnp.dot(act.astype(w_ref.dtype), w_ref[...],
                       preferred_element_type=jnp.float32)

    def encoder(x, d1_ref, b1_ref, d2_ref, b2_ref):
        h = jnp.maximum(mm(x, d1_ref) + b1_ref[...], 0.0)   # conv1 + bias + ReLU
        h = jnp.maximum(mm(h, d2_ref) + b2_ref[...], 0.0)   # conv2 + bias + ReLU
        return h

    xv = x_ref[...]                       # (TB, C*H*W) f32, (c,h,w)-flattened rows
    n_main = d1m_ref.shape[0]             # 2*H*W  (128-lane aligned)
    n_side = d1s_ref.shape[0]             # 1*H*W  (128-lane aligned)
    xm = xv[:, :n_main]                   # channels 0..1  -> main encoder
    xs = xv[:, n_main:n_main + n_side]    # channel 2      -> side encoder

    h_m = encoder(xm, d1m_ref, b1m_ref, d2m_ref, b2m_ref)
    h_s = encoder(xs, d1s_ref, b1s_ref, d2s_ref, b2s_ref)

    # a = sigmoid(alpha): (1,1) VMEM value, transcendental on the EUP slot.
    a = jax.nn.sigmoid(alpha_ref[...])

    # Fused final Linear + blend: one (TB, 2*flat) @ (2*flat, out_dim) GEMM.
    # (last_layer's leading ReLU is idempotent after the conv2 ReLU above.)
    h_cat = jnp.concatenate([a * h_m, (1.0 - a) * h_s], axis=1)
    bias = a * blm_ref[...] + (1.0 - a) * bls_ref[...]
    o_ref[...] = (mm(h_cat, wout_ref) + bias).astype(o_ref.dtype)


# ----------------------------------------------------------------------------
# Parameter initialisation (PyTorch-style uniform fan-in init)
# ----------------------------------------------------------------------------
def _conv_out(n):
    return (n + 2 * _PAD - _KSIZE) // _STRIDE + 1


def init_gen_encoder_params(key, c_in, h, w, output_dim):
    k1, k2, k3, k4, k5, k6 = jax.random.split(key, 6)
    h2, w2 = _conv_out(_conv_out(h)), _conv_out(_conv_out(w))
    flat = _C2 * h2 * w2
    s1 = 1.0 / math.sqrt(_KSIZE * _KSIZE * c_in)
    s2 = 1.0 / math.sqrt(_KSIZE * _KSIZE * _C1)
    s3 = 1.0 / math.sqrt(flat)
    return dict(
        w1=jax.random.uniform(k1, (_KSIZE, _KSIZE, c_in, _C1), jnp.float32, -s1, s1),
        b1=jax.random.uniform(k2, (_C1,), jnp.float32, -s1, s1),
        w2=jax.random.uniform(k3, (_KSIZE, _KSIZE, _C1, _C2), jnp.float32, -s2, s2),
        b2=jax.random.uniform(k4, (_C2,), jnp.float32, -s2, s2),
        wl=jax.random.uniform(k5, (flat, output_dim), jnp.float32, -s3, s3),
        bl=jax.random.uniform(k6, (output_dim,), jnp.float32, -s3, s3),
    )


def init_gen_side_tuner_params(key, obs_dim, output_dim=_OUT_DIM_DEFAULT):
    c, h, w = obs_dim
    k_enc, k_side = jax.random.split(key, 2)
    return dict(
        encoder=init_gen_encoder_params(k_enc, 2, h, w, output_dim),
        side_encoder=init_gen_encoder_params(k_side, 1, h, w, output_dim),
        alpha=jnp.zeros((), jnp.float32),   # torch.nn.Parameter(torch.tensor(0.0))
    )


# ----------------------------------------------------------------------------
# One-time parameter folding: conv layer -> dense (lane-dense) GEMM operator
# ----------------------------------------------------------------------------
def _fold_conv(w, b, in_hw, stride, pad, input_order):
    """Fold a conv layer into (D, b_big, out_hw) so that, for inputs flattened
    in `input_order` ("chw" = PyTorch NCHW row flatten, "hwc"):
        flatten_hwc(conv(x)) == x_flat @ D + b_big.
    Built by pushing an identity batch through lax.conv — pure, input-
    independent parameter-setup glue done once outside the kernel."""
    kh, kw, cin, cout = w.shape
    H, W = in_hw
    n_in = H * W * cin
    eye = jnp.eye(n_in, dtype=jnp.float32)
    if input_order == "chw":
        basis = eye.reshape(n_in, cin, H, W).transpose(0, 2, 3, 1)   # -> NHWC
    else:
        basis = eye.reshape(n_in, H, W, cin)
    y = jax.lax.conv_general_dilated(
        basis, w.astype(jnp.float32),
        window_strides=(stride, stride),
        padding=((pad, pad), (pad, pad)),
        dimension_numbers=("NHWC", "HWIO", "NHWC"),
        precision=jax.lax.Precision.HIGHEST)
    _, Ho, Wo, _ = y.shape
    d = y.reshape(n_in, Ho * Wo * cout)
    b_big = jnp.tile(b.astype(jnp.float32), Ho * Wo).reshape(1, Ho * Wo * cout)
    return d, b_big, (Ho, Wo)


def _fold_gen_encoder_params(p, in_hw):
    # conv1 accepts (c,h,w)-flattened rows (PyTorch NCHW layout) directly —
    # the layout permutation is absorbed into D1's rows at fold time.
    d1, b1, hw1 = _fold_conv(p["w1"], p["b1"], in_hw, _STRIDE, _PAD, "chw")
    d2, b2, hw2 = _fold_conv(p["w2"], p["b2"], hw1, _STRIDE, _PAD, "hwc")
    assert hw2[0] * hw2[1] * _C2 == p["wl"].shape[0]
    # NOTE: hidden activations are flattened in (h,w,c) order, while PyTorch
    # flattens (c,h,w).  Equivalent for freshly-initialised `wl`; permute `wl`
    # rows if porting PyTorch-trained weights.
    return dict(
        d1=d1.astype(COMPUTE_DTYPE), b1=b1,
        d2=d2.astype(COMPUTE_DTYPE), b2=b2,
        wl=p["wl"].astype(jnp.float32),
        bl=p["bl"].reshape(1, -1).astype(jnp.float32),
    )


def fold_gen_side_tuner_params(params, hw):
    """One-time, input-independent preprocessing for the fused kernel."""
    main = _fold_gen_encoder_params(params["encoder"], hw)
    side = _fold_gen_encoder_params(params["side_encoder"], hw)
    # Stack the two output Linears into one operator for the fused blend-GEMM.
    w_out = jnp.concatenate([main["wl"], side["wl"]], axis=0).astype(COMPUTE_DTYPE)
    weights = (main["d1"], main["b1"], main["d2"], main["b2"],
               side["d1"], side["b1"], side["d2"], side["b2"],
               w_out, main["bl"], side["bl"])
    return dict(
        alpha=params["alpha"].reshape(1, 1).astype(jnp.float32),
        weights=weights,
    )


# ----------------------------------------------------------------------------
# Forward wrapper
# ----------------------------------------------------------------------------
def _round_up(n, m):
    return ((n + m - 1) // m) * m


def _cdiv(a, b):
    return -(-a // b)


def _pick_batch_tile(n, max_tb=512, split_threshold=256):
    """Balanced, 8-row-aligned batch tiles.  Pad waste < 8 rows per tile; for
    n > split_threshold we force >=2 grid steps so the 'parallel' batch axis
    splits across v7x's two TensorCores."""
    tiles = max(1, _cdiv(n, max_tb))
    if n > split_threshold:
        tiles = max(tiles, 2)
    return _round_up(_cdiv(n, tiles), 8)


@jax.jit
def gen_side_tuner_forward(folded, x_nchw):
    """x_nchw: (N, C>=3, H, W) PyTorch layout -> (N, output_dim)."""
    N, C, H, W = x_nchw.shape
    # Free view: NCHW row flatten is exactly the (c,h,w) order the folded
    # first-layer operators expect.  No transpose / copy pass over the input.
    x_flat = x_nchw.astype(jnp.float32).reshape(N, C * H * W)

    TB = _pick_batch_tile(N)
    Npad = _round_up(N, TB)
    if Npad != N:
        x_flat = jnp.pad(x_flat, ((0, Npad - N), (0, 0)))

    weights = folded["weights"]
    out_dim = weights[8].shape[1]          # stacked output Linear (2*flat, out_dim)
    flat_in = C * H * W

    in_specs = (
        [pl.BlockSpec((1, 1), lambda i: (0, 0)),                       # alpha
         pl.BlockSpec((TB, flat_in), lambda i: (i, 0))]                # input tile
        + [pl.BlockSpec(w.shape, lambda i: (0, 0)) for w in weights]   # resident weights
    )

    # TODO(synk): out_dim=32 forces masked vst.msk stores on writeback; lane-
    # padding the output slab to 128 is a low-priority trim (tiny bytes here).
    out = pl.pallas_call(
        _gen_side_tuner_kernel,
        out_shape=jax.ShapeDtypeStruct((Npad, out_dim), jnp.float32),
        grid=(Npad // TB,),
        in_specs=in_specs,
        out_specs=pl.BlockSpec((TB, out_dim), lambda i: (i, 0)),
        compiler_params=pltpu.CompilerParams(
            dimension_semantics=("parallel",),
            vmem_limit_bytes=32 * 1024 * 1024),
    )(folded["alpha"], x_flat, *weights)
    return out[:N]


# ----------------------------------------------------------------------------
# Pure-JAX reference (same (h,w,c) hidden-flatten convention as the kernel)
# ----------------------------------------------------------------------------
def _reference_forward(params, x_nchw):
    def conv(x, w, b):
        y = jax.lax.conv_general_dilated(
            x, w, (_STRIDE, _STRIDE), ((_PAD, _PAD), (_PAD, _PAD)),
            dimension_numbers=("NHWC", "HWIO", "NHWC"),
            precision=jax.lax.Precision.HIGHEST)
        return y + b

    def enc(p, x_nhwc):
        h = jax.nn.relu(conv(x_nhwc, p["w1"], p["b1"]))
        h = jax.nn.relu(conv(h, p["w2"], p["b2"]))
        h = h.reshape(h.shape[0], -1)
        return jax.nn.relu(h) @ p["wl"] + p["bl"]      # Sequential(ReLU, Linear)

    x = jnp.transpose(x_nchw.astype(jnp.float32), (0, 2, 3, 1))
    a = jax.nn.sigmoid(params["alpha"])
    z_main = enc(params["encoder"], x[..., :2])
    z_side = enc(params["side_encoder"], x[..., 2:3])
    return a * z_main + (1.0 - a) * z_side


# ----------------------------------------------------------------------------
# Main
# ----------------------------------------------------------------------------
if __name__ == "__main__":
    key = jax.random.PRNGKey(0)
    k_x, k_p = jax.random.split(key)

    N, C, H, W = 2, 3, 16, 16
    x = jax.random.normal(k_x, (N, C, H, W), dtype=jnp.float32)

    params = init_gen_side_tuner_params(k_p, obs_dim=(C, H, W), output_dim=32)
    folded = fold_gen_side_tuner_params(params, (H, W))

    out = gen_side_tuner_forward(folded, x)
    out = jax.block_until_ready(out)

    assert out.shape == (N, 32), out.shape
    assert bool(jnp.all(jnp.isfinite(out)))

    # Loose tolerance: bf16 operand rounding (f32 accumulation) vs f32 reference.
    ref = _reference_forward(params, x)
    assert bool(jnp.allclose(out, ref, atol=1e-1, rtol=1e-1)), (
        float(jnp.max(jnp.abs(out - ref))))

    print("KERNEL_OK")
</pallas_src>

<mosaic_0001>
module attributes {stable_mosaic.version = 11 : i64} {
  func.func @_gen_side_tuner_kernel(%arg0: i32, %arg1: memref<1x1xf32, #tpu.memory_space<vmem>>, %arg2: memref<8x768xf32, #tpu.memory_space<vmem>>, %arg3: memref<512x512xbf16, #tpu.memory_space<vmem>>, %arg4: memref<1x512xf32, #tpu.memory_space<vmem>>, %arg5: memref<512x256xbf16, #tpu.memory_space<vmem>>, %arg6: memref<1x256xf32, #tpu.memory_space<vmem>>, %arg7: memref<256x512xbf16, #tpu.memory_space<vmem>>, %arg8: memref<1x512xf32, #tpu.memory_space<vmem>>, %arg9: memref<512x256xbf16, #tpu.memory_space<vmem>>, %arg10: memref<1x256xf32, #tpu.memory_space<vmem>>, %arg11: memref<512x32xbf16, #tpu.memory_space<vmem>>, %arg12: memref<1x32xf32, #tpu.memory_space<vmem>>, %arg13: memref<1x32xf32, #tpu.memory_space<vmem>>, %arg14: memref<8x32xf32, #tpu.memory_space<vmem>>) attributes {dimension_semantics = [#tpu.dimension_semantics<parallel>], iteration_bounds = array<i64: 1>, scalar_prefetch = 0 : i64, scratch_operands = 0 : i64, tpu.core_type = #tpu.core_type<tc>, window_params = [{pipeline_mode = #tpu.pipeline_mode<synchronous>, transform_indices = @transform_0, window_bounds = array<i64: 1, 1>}, {transform_indices = @transform_1, window_bounds = array<i64: 8, 768>}, {pipeline_mode = #tpu.pipeline_mode<synchronous>, transform_indices = @transform_2, window_bounds = array<i64: 512, 512>}, {pipeline_mode = #tpu.pipeline_mode<synchronous>, transform_indices = @transform_3, window_bounds = array<i64: 1, 512>}, {pipeline_mode = #tpu.pipeline_mode<synchronous>, transform_indices = @transform_4, window_bounds = array<i64: 512, 256>}, {pipeline_mode = #tpu.pipeline_mode<synchronous>, transform_indices = @transform_5, window_bounds = array<i64: 1, 256>}, {pipeline_mode = #tpu.pipeline_mode<synchronous>, transform_indices = @transform_6, window_bounds = array<i64: 256, 512>}, {pipeline_mode = #tpu.pipeline_mode<synchronous>, transform_indices = @transform_7, window_bounds = array<i64: 1, 512>}, {pipeline_mode = #tpu.pipeline_mode<synchronous>, transform_indices = @transform_8, window_bounds = array<i64: 512, 256>}, {pipeline_mode = #tpu.pipeline_mode<synchronous>, transform_indices = @transform_9, window_bounds = array<i64: 1, 256>}, {pipeline_mode = #tpu.pipeline_mode<synchronous>, transform_indices = @transform_10, window_bounds = array<i64: 512, 32>}, {pipeline_mode = #tpu.pipeline_mode<synchronous>, transform_indices = @transform_11, window_bounds = array<i64: 1, 32>}, {pipeline_mode = #tpu.pipeline_mode<synchronous>, transform_indices = @transform_12, window_bounds = array<i64: 1, 32>}, {transform_indices = @transform_13, window_bounds = array<i64: 8, 32>}]} {
    %c0 = arith.constant 0 : index
    %c0_0 = arith.constant 0 : index
    %0 = vector.load %arg2[%c0, %c0_0] : memref<8x768xf32, #tpu.memory_space<vmem>>, vector<8x768xf32>
    %1 = vector.extract_strided_slice %0 {offsets = [0, 0], sizes = [8, 512], strides = [1, 1]} : vector<8x768xf32> to vector<8x512xf32>
    %2 = vector.extract_strided_slice %0 {offsets = [0, 512], sizes = [8, 256], strides = [1, 1]} : vector<8x768xf32> to vector<8x256xf32>
    %3 = arith.truncf %1 : vector<8x512xf32> to vector<8x512xbf16>
    %c0_1 = arith.constant 0 : index
    %c0_2 = arith.constant 0 : index
    %4 = vector.load %arg3[%c0_1, %c0_2] : memref<512x512xbf16, #tpu.memory_space<vmem>>, vector<512x512xbf16>
    %cst = arith.constant dense<0.000000e+00> : vector<8x512xf32>
    %5 = tpu.matmul %3, %4, %cst {dimension_numbers = #tpu.dot_dimension_numbers<[1], [0], [0], [1], [0, 0, 1, 1], [], []>} : vector<8x512xbf16>, vector<512x512xbf16>, vector<8x512xf32> -> vector<8x512xf32>
    %c0_3 = arith.constant 0 : index
    %c0_4 = arith.constant 0 : index
    %6 = vector.load %arg4[%c0_3, %c0_4] : memref<1x512xf32, #tpu.memory_space<vmem>>, vector<1x512xf32>
    %7 = vector.broadcast %6 : vector<1x512xf32> to vector<8x512xf32>
    %8 = arith.addf %5, %7 : vector<8x512xf32>
    %cst_5 = arith.constant 0.000000e+00 : f32
    %9 = vector.broadcast %cst_5 : f32 to vector<8x512xf32>
    %10 = arith.maximumf %8, %9 : vector<8x512xf32>
    %11 = arith.truncf %10 : vector<8x512xf32> to vector<8x512xbf16>
    %c0_6 = arith.constant 0 : index
    %c0_7 = arith.constant 0 : index
    %12 = vector.load %arg5[%c0_6, %c0_7] : memref<512x256xbf16, #tpu.memory_space<vmem>>, vector<512x256xbf16>
    %cst_8 = arith.constant dense<0.000000e+00> : vector<8x256xf32>
    %13 = tpu.matmul %11, %12, %cst_8 {dimension_numbers = #tpu.dot_dimension_numbers<[1], [0], [0], [1], [0, 0, 1, 1], [], []>} : vector<8x512xbf16>, vector<512x256xbf16>, vector<8x256xf32> -> vector<8x256xf32>
    %c0_9 = arith.constant 0 : index
    %c0_10 = arith.constant 0 : index
    %14 = vector.load %arg6[%c0_9, %c0_10] : memref<1x256xf32, #tpu.memory_space<vmem>>, vector<1x256xf32>
    %15 = vector.broadcast %14 : vector<1x256xf32> to vector<8x256xf32>
    %16 = arith.addf %13, %15 : vector<8x256xf32>
    %cst_11 = arith.constant 0.000000e+00 : f32
    %17 = vector.broadcast %cst_11 : f32 to vector<8x256xf32>
    %18 = arith.maximumf %16, %17 : vector<8x256xf32>
    %19 = arith.truncf %2 : vector<8x256xf32> to vector<8x256xbf16>
    %c0_12 = arith.constant 0 : index
    %c0_13 = arith.constant 0 : index
    %20 = vector.load %arg7[%c0_12, %c0_13] : memref<256x512xbf16, #tpu.memory_space<vmem>>, vector<256x512xbf16>
    %cst_14 = arith.constant dense<0.000000e+00> : vector<8x512xf32>
    %21 = tpu.matmul %19, %20, %cst_14 {dimension_numbers = #tpu.dot_dimension_numbers<[1], [0], [0], [1], [0, 0, 1, 1], [], []>} : vector<8x256xbf16>, vector<256x512xbf16>, vector<8x512xf32> -> vector<8x512xf32>
    %c0_15 = arith.constant 0 : index
    %c0_16 = arith.constant 0 : index
    %22 = vector.load %arg8[%c0_15, %c0_16] : memref<1x512xf32, #tpu.memory_space<vmem>>, vector<1x512xf32>
    %23 = vector.broadcast %22 : vector<1x512xf32> to vector<8x512xf32>
    %24 = arith.addf %21, %23 : vector<8x512xf32>
    %cst_17 = arith.constant 0.000000e+00 : f32
    %25 = vector.broadcast %cst_17 : f32 to vector<8x512xf32>
    %26 = arith.maximumf %24, %25 : vector<8x512xf32>
    %27 = arith.truncf %26 : vector<8x512xf32> to vector<8x512xbf16>
    %c0_18 = arith.constant 0 : index
    %c0_19 = arith.constant 0 : index
    %28 = vector.load %arg9[%c0_18, %c0_19] : memref<512x256xbf16, #tpu.memory_space<vmem>>, vector<512x256xbf16>
    %cst_20 = arith.constant dense<0.000000e+00> : vector<8x256xf32>
    %29 = tpu.matmul %27, %28, %cst_20 {dimension_numbers = #tpu.dot_dimension_numbers<[1], [0], [0], [1], [0, 0, 1, 1], [], []>} : vector<8x512xbf16>, vector<512x256xbf16>, vector<8x256xf32> -> vector<8x256xf32>
    %c0_21 = arith.constant 0 : index
    %c0_22 = arith.constant 0 : index
    %30 = vector.load %arg10[%c0_21, %c0_22] : memref<1x256xf32, #tpu.memory_space<vmem>>, vector<1x256xf32>
    %31 = vector.broadcast %30 : vector<1x256xf32> to vector<8x256xf32>
    %32 = arith.addf %29, %31 : vector<8x256xf32>
    %cst_23 = arith.constant 0.000000e+00 : f32
    %33 = vector.broadcast %cst_23 : f32 to vector<8x256xf32>
    %34 = arith.maximumf %32, %33 : vector<8x256xf32>
    %c0_24 = arith.constant 0 : index
    %c0_25 = arith.constant 0 : index
    %35 = vector.load %arg1[%c0_24, %c0_25] : memref<1x1xf32, #tpu.memory_space<vmem>>, vector<1x1xf32>
    %36 = arith.negf %35 : vector<1x1xf32>
    %37 = math.exp %36 : vector<1x1xf32>
    %cst_26 = arith.constant 1.000000e+00 : f32
    %38 = vector.broadcast %cst_26 : f32 to vector<1x1xf32>
    %39 = arith.addf %38, %37 : vector<1x1xf32>
    %40 = arith.divf %38, %39 : vector<1x1xf32>
    %41 = vector.broadcast %40 : vector<1x1xf32> to vector<8x256xf32>
    %42 = arith.mulf %41, %18 : vector<8x256xf32>
    %cst_27 = arith.constant 1.000000e+00 : f32
    %43 = vector.broadcast %cst_27 : f32 to vector<1x1xf32>
    %44 = arith.subf %43, %40 : vector<1x1xf32>
    %45 = vector.broadcast %44 : vector<1x1xf32> to vector<8x256xf32>
    %46 = arith.mulf %45, %34 : vector<8x256xf32>
    %47 = tpu.concatenate %42, %46 in 1 : vector<8x256xf32>, vector<8x256xf32> -> vector<8x512xf32>
    %c0_28 = arith.constant 0 : index
    %c0_29 = arith.constant 0 : index
    %48 = vector.load %arg12[%c0_28, %c0_29] : memref<1x32xf32, #tpu.memory_space<vmem>>, vector<1x32xf32>
    %49 = vector.broadcast %40 : vector<1x1xf32> to vector<1x32xf32>
    %50 = arith.mulf %49, %48 : vector<1x32xf32>
    %cst_30 = arith.constant 1.000000e+00 : f32
    %51 = vector.broadcast %cst_30 : f32 to vector<1x1xf32>
    %52 = arith.subf %51, %40 : vector<1x1xf32>
    %c0_31 = arith.constant 0 : index
    %c0_32 = arith.constant 0 : index
    %53 = vector.load %arg13[%c0_31, %c0_32] : memref<1x32xf32, #tpu.memory_space<vmem>>, vector<1x32xf32>
    %54 = vector.broadcast %52 : vector<1x1xf32> to vector<1x32xf32>
    %55 = arith.mulf %54, %53 : vector<1x32xf32>
    %56 = arith.addf %50, %55 : vector<1x32xf32>
    %57 = arith.truncf %47 : vector<8x512xf32> to vector<8x512xbf16>
    %c0_33 = arith.constant 0 : index
    %c0_34 = arith.constant 0 : index
    %58 = vector.load %arg11[%c0_33, %c0_34] : memref<512x32xbf16, #tpu.memory_space<vmem>>, vector<512x32xbf16>
    %cst_35 = arith.constant dense<0.000000e+00> : vector<8x32xf32>
    %59 = tpu.matmul %57, %58, %cst_35 {dimension_numbers = #tpu.dot_dimension_numbers<[1], [0], [0], [1], [0, 0, 1, 1], [], []>} : vector<8x512xbf16>, vector<512x32xbf16>, vector<8x32xf32> -> vector<8x32xf32>
    %60 = vector.broadcast %56 : vector<1x32xf32> to vector<8x32xf32>
    %61 = arith.addf %59, %60 : vector<8x32xf32>
    %c0_36 = arith.constant 0 : index
    %c0_37 = arith.constant 0 : index
    %62 = vector.load %arg14[%c0_36, %c0_37] : memref<8x32xf32, #tpu.memory_space<vmem>>, vector<8x32xf32>
    tpu.vector_store %arg14[%c0_36, %c0_37], %61 {strides = array<i32>} : memref<8x32xf32, #tpu.memory_space<vmem>>, vector<8x32xf32>,
    return
  }
  func.func @transform_0(%arg0: i32) -> (i32, i32) {
    %c0_i32 = arith.constant 0 : i32
    %c0_i32_0 = arith.constant 0 : i32
    %c0_i32_1 = arith.constant 0 : i32
    return %c0_i32, %c0_i32_0 : i32, i32
  }
  func.func @transform_1(%arg0: i32) -> (i32, i32) {
    %c0_i32 = arith.constant 0 : i32
    %c0_i32_0 = arith.constant 0 : i32
    return %arg0, %c0_i32 : i32, i32
  }
  func.func @transform_2(%arg0: i32) -> (i32, i32) {
    %c0_i32 = arith.constant 0 : i32
    %c0_i32_0 = arith.constant 0 : i32
    %c0_i32_1 = arith.constant 0 : i32
    return %c0_i32, %c0_i32_0 : i32, i32
  }
  func.func @transform_3(%arg0: i32) -> (i32, i32) {
    %c0_i32 = arith.constant 0 : i32
    %c0_i32_0 = arith.constant 0 : i32
    %c0_i32_1 = arith.constant 0 : i32
    return %c0_i32, %c0_i32_0 : i32, i32
  }
  func.func @transform_4(%arg0: i32) -> (i32, i32) {
    %c0_i32 = arith.constant 0 : i32
    %c0_i32_0 = arith.constant 0 : i32
    %c0_i32_1 = arith.constant 0 : i32
    return %c0_i32, %c0_i32_0 : i32, i32
  }
  func.func @transform_5(%arg0: i32) -> (i32, i32) {
    %c0_i32 = arith.constant 0 : i32
    %c0_i32_0 = arith.constant 0 : i32
    %c0_i32_1 = arith.constant 0 : i32
    return %c0_i32, %c0_i32_0 : i32, i32
  }
  func.func @transform_6(%arg0: i32) -> (i32, i32) {
    %c0_i32 = arith.constant 0 : i32
    %c0_i32_0 = arith.constant 0 : i32
    %c0_i32_1 = arith.constant 0 : i32
    return %c0_i32, %c0_i32_0 : i32, i32
  }
  func.func @transform_7(%arg0: i32) -> (i32, i32) {
    %c0_i32 = arith.constant 0 : i32
    %c0_i32_0 = arith.constant 0 : i32
    %c0_i32_1 = arith.constant 0 : i32
    return %c0_i32, %c0_i32_0 : i32, i32
  }
  func.func @transform_8(%arg0: i32) -> (i32, i32) {
    %c0_i32 = arith.constant 0 : i32
    %c0_i32_0 = arith.constant 0 : i32
    %c0_i32_1 = arith.constant 0 : i32
    return %c0_i32, %c0_i32_0 : i32, i32
  }
  func.func @transform_9(%arg0: i32) -> (i32, i32) {
    %c0_i32 = arith.constant 0 : i32
    %c0_i32_0 = arith.constant 0 : i32
    %c0_i32_1 = arith.constant 0 : i32
    return %c0_i32, %c0_i32_0 : i32, i32
  }
  func.func @transform_10(%arg0: i32) -> (i32, i32) {
    %c0_i32 = arith.constant 0 : i32
    %c0_i32_0 = arith.constant 0 : i32
    %c0_i32_1 = arith.constant 0 : i32
    return %c0_i32, %c0_i32_0 : i32, i32
  }
  func.func @transform_11(%arg0: i32) -> (i32, i32) {
    %c0_i32 = arith.constant 0 : i32
    %c0_i32_0 = arith.constant 0 : i32
    %c0_i32_1 = arith.constant 0 : i32
    return %c0_i32, %c0_i32_0 : i32, i32
  }
  func.func @transform_12(%arg0: i32) -> (i32, i32) {
    %c0_i32 = arith.constant 0 : i32
    %c0_i32_0 = arith.constant 0 : i32
    %c0_i32_1 = arith.constant 0 : i32
    return %c0_i32, %c0_i32_0 : i32, i32
  }
  func.func @transform_13(%arg0: i32) -> (i32, i32) {
    %c0_i32 = arith.constant 0 : i32
    %c0_i32_0 = arith.constant 0 : i32
    return %arg0, %c0_i32 : i32, i32
  }
}

</mosaic_0001>

<bundles_post_ra>
// kernel: gen_side_tuner_forward.1
= control target key start
LH: loop header
LB: loop body
LE: loop exit
PB: predicated region body
PF: predicated region fallthrough
CT: control target
= control target key end

     0   :  { %s5212_s0 = inlined_call_operand.<no memory space> [shape: f32[1,1], index: 0, kind: input, shape index: {}]   ;;  %s5213_s1 = inlined_call_operand.vmem [shape: f32[8,768], index: 1, kind: input, shape index: {}]   ;;  %s5214_s2 = inlined_call_operand.hbm [shape: bf16[512,512], index: 2, kind: input, shape index: {}]   ;;  %s5215_s3 = inlined_call_operand.vmem [shape: f32[1,512], index: 3, kind: input, shape index: {}]   ;;  %s5216_s4 = inlined_call_operand.hbm [shape: bf16[512,256], index: 4, kind: input, shape index: {}]   ;;  %s5217_s5 = inlined_call_operand.vmem [shape: f32[1,256], index: 5, kind: input, shape index: {}]   ;;  %s5218_s6 = inlined_call_operand.hbm [shape: bf16[256,512], index: 6, kind: input, shape index: {}]   ;;  %s5219_s7 = inlined_call_operand.vmem [shape: f32[1,512], index: 7, kind: input, shape index: {}]   ;;  %s5220_s8 = inlined_call_operand.hbm [shape: bf16[512,256], index: 8, kind: input, shape index: {}]   ;;  %s5221_s9 = inlined_call_operand.vmem [shape: f32[1,256], index: 9, kind: input, shape index: {}]   ;;  %s5222_s10 = inlined_call_operand.vmem [shape: bf16[512,32], index: 10, kind: input, shape index: {}]   ;;  %s5223_s11 = inlined_call_operand.vmem [shape: f32[1,32], index: 11, kind: input, shape index: {}]   ;;  %s5224_s12 = inlined_call_operand.vmem [shape: f32[1,32], index: 12, kind: input, shape index: {}]   ;;  %s5225_s13 = inlined_call_operand.vmem [shape: f32[8,32], index: 13, kind: output, shape index: {}]  }
   0x1   :  { %v18_v0 = vstv %s5212_s0 }
   0x2   :  { %19 = vst [vmem:[#allocation2] sm:$0x1] %v18_v0 }
   0x3   :  { %20 = vsyncpa [#allocation4], 0 }
   0x4   :  { %21 = vsyncpa [#allocation6], 0  ;;  %s46_s29 = sshll.u32 %s5216_s4, 4  ;;  %s47_s29 = int_to_ptr.hbm [resolvable:$true] %s46_s29 }
   0x5   :  { %22 = vsyncpa [#allocation9], 0  ;;  %s4867_s30 = smov [#allocation5]   ;;  %s31_s17 = sshll.u32 %s5214_s2, 4  ;;  %s32_s17 = int_to_ptr.hbm [resolvable:$true] %s31_s17 }
   0x6   :  { %s48_s14 = sshll.u32 %s4867_s30, 4  ;;  %s4868_s18 = smov 128   ;;  %s49_s14 = int_to_ptr.vmem [resolvable:$true] %s48_s14 }
   0x7   :  { %s4869_s19 = smov 8   ;;  %s4870_s0 = smov [#allocation3]  }
   0x8   :  { %54 = dma.hbm_to_vmem [thread:$0]  %s47_s29, 8192, %s49_s14, [#allocation6], %s4868_s18, %s4868_s18, %s4869_s19  }
   0x9   :  { %s33_s20 = sshll.u32 %s4870_s0, 4  ;;  %s4871_s21 = smov 256   ;;  %s34_s20 = int_to_ptr.vmem [resolvable:$true] %s33_s20 }
   0xa   :  { %s4872_s22 = smov 16   ;;  %s61_s24 = sshll.u32 %s5218_s6, 4  ;;  %s62_s24 = int_to_ptr.hbm [resolvable:$true] %s61_s24 }
   0xb   :  { %39 = dma.hbm_to_vmem [thread:$0]  %s32_s17, 16384, %s34_s20, [#allocation4], %s4871_s21, %s4871_s21, %s4872_s22  }
   0xc   :  { %s4873_s25 = smov [#allocation7]   ;;  %s76_s28 = sshll.u32 %s5220_s8, 4  ;;  %s77_s28 = int_to_ptr.hbm [resolvable:$true] %s76_s28 }
   0xd   :  { %s63_s26 = sshll.u32 %s4873_s25, 4  ;;  %s4874_s29 = smov [#allocation8]   ;;  %s64_s26 = int_to_ptr.vmem [resolvable:$true] %s63_s26 }
   0xe   :  { %69 = dma.hbm_to_vmem [thread:$0]  %s62_s24, 8192, %s64_s26, [#allocation6], %s4871_s21, %s4871_s21, %s4872_s22  }
   0xf   :  { %s78_s30 = sshll.u32 %s4874_s29, 4  ;;  %s79_s30 = int_to_ptr.vmem [resolvable:$true] %s78_s30 }
  0x10   :  { %84 = dma.hbm_to_vmem [thread:$0]  %s77_s28, 8192, %s79_s30, [#allocation9], %s4868_s18, %s4868_s18, %s4869_s19  }
  0x11   :  { %4861 = dma.done.wait [#allocation4], 16384  }
  0x12   :  { %4862 = vsyncadd [#allocation4], 4294950912 }
  0x13   :  { %4863 = dma.done.wait [#allocation6], 16384  }
  0x14   :  { %4864 = vsyncadd [#allocation6], 4294950912 }
  0x15   :  { %4865 = dma.done.wait [#allocation9], 8192  }
  0x16   :  { %4866 = vsyncadd [#allocation9], 4294959104  ;;  %v3103_v1 = vld [vmem:[#allocation3 + $0xe0] sm:$0xf]  ;;  %v4428_v2 = vld [vmem:[#allocation3 + $0xec] sm:$0xf0] }
  0x17   :  { %v3231_v3 = vld [vmem:[#allocation3 + $0x1e0] sm:$0xf]  ;;  %v3104_v4 = vor.u32 %v4428_v2, %v3103_v1  ;;  %v4460_v5 = vld [vmem:[#allocation3 + $0x1ec] sm:$0xf0]  ;;  %vm2980_vm4 = vcmask 261120  }
  0x18   :  { %v3359_v6 = vld [vmem:[#allocation3 + $0x2e0] sm:$0xf]  ;;  %v4492_v7 = vld [vmem:[#allocation3 + $0x2ec] sm:$0xf0]  ;;  %v3232_v8 = vor.u32 %v4460_v5, %v3231_v3 }
  0x19   :  { %v3360_v9 = vor.u32 %v4492_v7, %v3359_v6  ;;  %v3487_v10 = vld [vmem:[#allocation3 + $0x3e0] sm:$0xf]  ;;  %v4524_v11 = vld [vmem:[#allocation3 + $0x3ec] sm:$0xf0]  ;;  %897 = vmatpush.bf16.msra.mxu0 %v3104_v4 }
  0x1a   :  { %v3087_v12 = vld [vmem:[#allocation3 + $0xc0] sm:$0xf]  ;;  %v3488_v13 = vor.u32 %v4524_v11, %v3487_v10  ;;  %v4424_v14 = vld [vmem:[#allocation3 + $0xcc] sm:$0xf0]  ;;  %910 = vmatpush.bf16.msra.mxu1 %v3232_v8 }
  0x1b   :  { %v3215_v15 = vld [vmem:[#allocation3 + $0x1c0] sm:$0xf]  ;;  %v4456_v16 = vld [vmem:[#allocation3 + $0x1cc] sm:$0xf0]  ;;  %923 = vmatpush.bf16.msra.mxu2 %v3360_v9  ;;  %v3088_v17 = vor.u32 %v4424_v14, %v3087_v12 }
  0x1c   :  { %v3216_v18 = vor.u32 %v4456_v16, %v3215_v15  ;;  %v3343_v19 = vld [vmem:[#allocation3 + $0x2c0] sm:$0xf]  ;;  %v4488_v20 = vld [vmem:[#allocation3 + $0x2cc] sm:$0xf0]  ;;  %936 = vmatpush.bf16.msra.mxu3 %v3488_v13 }
  0x1d   :  { %v3471_v21 = vld [vmem:[#allocation3 + $0x3c0] sm:$0xf]  ;;  %v3344_v22 = vor.u32 %v4488_v20, %v3343_v19  ;;  %v4520_v23 = vld [vmem:[#allocation3 + $0x3cc] sm:$0xf0]  ;;  %898 = vmatpush.bf16.msra.mxu0 %v3088_v17 }
  0x1e   :  { %v3071_v24 = vld [vmem:[#allocation3 + $0xa0] sm:$0xf]  ;;  %v4420_v25 = vld [vmem:[#allocation3 + $0xac] sm:$0xf0]  ;;  %v3472_v26 = vor.u32 %v4520_v23, %v3471_v21  ;;  %911 = vmatpush.bf16.msra.mxu1 %v3216_v18 }
  0x1f   :  { %v3199_v27 = vld [vmem:[#allocation3 + $0x1a0] sm:$0xf]  ;;  %v4452_v28 = vld [vmem:[#allocation3 + $0x1ac] sm:$0xf0]  ;;  %v3072_v30 = vor.u32 %v4420_v25, %v3071_v24  ;;  %924 = vmatpush.bf16.msra.mxu2 %v3344_v22 }
  0x20   :  { %v3327_v29 = vld [vmem:[#allocation3 + $0x2a0] sm:$0xf]  ;;  %v4484_v31 = vld [vmem:[#allocation3 + $0x2ac] sm:$0xf0]  ;;  %v3200_v34 = vor.u32 %v4452_v28, %v3199_v27  ;;  %937 = vmatpush.bf16.msra.mxu3 %v3472_v26 }
  0x21   :  { %v3455_v32 = vld [vmem:[#allocation3 + $0x3a0] sm:$0xf]  ;;  %v4516_v33 = vld [vmem:[#allocation3 + $0x3ac] sm:$0xf0]  ;;  %v3328_v35 = vor.u32 %v4484_v31, %v3327_v29  ;;  %899 = vmatpush.bf16.msra.mxu0 %v3072_v30  ;;  %v4426_v29 = vld [vmem:[#allocation3 + $0xe4] sm:$0xf] }
  0x22   :  { %v3055_v36 = vld [vmem:[#allocation3 + $0x80] sm:$0xf]  ;;  %v4416_v37 = vld [vmem:[#allocation3 + $0x8c] sm:$0xf0]  ;;  %v3456_v39 = vor.u32 %v4516_v33, %v3455_v32  ;;  %912 = vmatpush.bf16.msra.mxu1 %v3200_v34  ;;  %v3105_v30 = vld [vmem:[#allocation3 + $0xf0] sm:$0xf0] }
  0x23   :  { %v3183_v38 = vld [vmem:[#allocation3 + $0x180] sm:$0xf]  ;;  %v4448_v40 = vld [vmem:[#allocation3 + $0x18c] sm:$0xf0]  ;;  %v3056_v45 = vor.u32 %v4416_v37, %v3055_v36  ;;  %925 = vmatpush.bf16.msra.mxu2 %v3328_v35  ;;  %v4458_v31 = vld [vmem:[#allocation3 + $0x1e4] sm:$0xf] }
  0x24   :  { %v3311_v41 = vld [vmem:[#allocation3 + $0x280] sm:$0xf]  ;;  %v4480_v42 = vld [vmem:[#allocation3 + $0x28c] sm:$0xf0]  ;;  %v3184_v46 = vor.u32 %v4448_v40, %v3183_v38  ;;  %938 = vmatpush.bf16.msra.mxu3 %v3456_v39  ;;  %v3233_v33 = vld [vmem:[#allocation3 + $0x1f0] sm:$0xf0] }
  0x25   :  { %v3439_v43 = vld [vmem:[#allocation3 + $0x380] sm:$0xf]  ;;  %v4512_v44 = vld [vmem:[#allocation3 + $0x38c] sm:$0xf0]  ;;  %v3312_v47 = vor.u32 %v4480_v42, %v3311_v41  ;;  %900 = vmatpush.bf16.msra.mxu0 %v3056_v45  ;;  %v4490_v34 = vld [vmem:[#allocation3 + $0x2e4] sm:$0xf]  ;;  %v3108_v42 = vor.u32 %v4426_v29, %v3105_v30 }
  0x26   :  { %v3039_v48 = vld [vmem:[#allocation3 + $0x60] sm:$0xf]  ;;  %v4412_v49 = vld [vmem:[#allocation3 + $0x6c] sm:$0xf0]  ;;  %v3440_v51 = vor.u32 %v4512_v44, %v3439_v43  ;;  %913 = vmatpush.bf16.msra.mxu1 %v3184_v46  ;;  %v3361_v35 = vld [vmem:[#allocation3 + $0x2f0] sm:$0xf0]  ;;  %v3236_v46 = vor.u32 %v4458_v31, %v3233_v33 }
  0x27   :  { %v3167_v50 = vld [vmem:[#allocation3 + $0x160] sm:$0xf]  ;;  %v4444_v52 = vld [vmem:[#allocation3 + $0x16c] sm:$0xf0]  ;;  %v3040_v57 = vor.u32 %v4412_v49, %v3039_v48  ;;  %926 = vmatpush.bf16.msra.mxu2 %v3312_v47  ;;  %v4522_v38 = vld [vmem:[#allocation3 + $0x3e4] sm:$0xf]  ;;  %v3364_v47 = vor.u32 %v4490_v34, %v3361_v35 }
  0x28   :  { %v3295_v53 = vld [vmem:[#allocation3 + $0x260] sm:$0xf]  ;;  %v4476_v54 = vld [vmem:[#allocation3 + $0x26c] sm:$0xf0]  ;;  %v3168_v58 = vor.u32 %v4444_v52, %v3167_v50  ;;  %939 = vmatpush.bf16.msra.mxu3 %v3440_v51  ;;  %v3489_v39 = vld [vmem:[#allocation3 + $0x3f0] sm:$0xf0] }
  0x29   :  { %v3423_v55 = vld [vmem:[#allocation3 + $0x360] sm:$0xf]  ;;  %v4508_v56 = vld [vmem:[#allocation3 + $0x36c] sm:$0xf0]  ;;  %v3296_v59 = vor.u32 %v4476_v54, %v3295_v53  ;;  %901 = vmatpush.bf16.msra.mxu0 %v3040_v57  ;;  %v4422_v43 = vld [vmem:[#allocation3 + $0xc4] sm:$0xf]  ;;  %v3492_v51 = vor.u32 %v4522_v38, %v3489_v39 }
  0x2a   :  { %v3023_v60 = vld [vmem:[#allocation3 + $0x40] sm:$0xf]  ;;  %v4408_v61 = vld [vmem:[#allocation3 + $0x4c] sm:$0xf0]  ;;  %v3424_v63 = vor.u32 %v4508_v56, %v3423_v55  ;;  %914 = vmatpush.bf16.msra.mxu1 %v3168_v58  ;;  %v112_v45 = vld [vmem:[%s5213_s1 + $0x18] sm:$0xff] }
  0x2b   :  { %v3151_v62 = vld [vmem:[#allocation3 + $0x140] sm:$0xf]  ;;  %v4440_v0 = vld [vmem:[#allocation3 + $0x14c] sm:$0xf0]  ;;  %v3024_v5 = vor.u32 %v4408_v61, %v3023_v60  ;;  %927 = vmatpush.bf16.msra.mxu2 %v3296_v59  ;;  %v3089_v48 = vld [vmem:[#allocation3 + $0xd0] sm:$0xf0]  ;;  %v4977_v59 = vpack.c.bf16 %v112_v45, %v112_v45 }
  0x2c   :  { %v3279_v1 = vld [vmem:[#allocation3 + $0x240] sm:$0xf]  ;;  %v4472_v2 = vld [vmem:[#allocation3 + $0x24c] sm:$0xf0]  ;;  %v3152_v6 = vor.u32 %v4440_v0, %v3151_v62  ;;  %940 = vmatpush.bf16.msra.mxu3 %v3424_v63  ;;  %v4454_v49 = vld [vmem:[#allocation3 + $0x1c4] sm:$0xf]  ;;  %v3092_v60 = vor.u32 %v4422_v43, %v3089_v48 }
  0x2d   :  { %v3407_v3 = vld [vmem:[#allocation3 + $0x340] sm:$0xf]  ;;  %v4504_v4 = vld [vmem:[#allocation3 + $0x34c] sm:$0xf0]  ;;  %v3280_v7 = vor.u32 %v4472_v2, %v3279_v1  ;;  %902 = vmatpush.bf16.msra.mxu0 %v3024_v5  ;;  %v110_v50 = vld [vmem:[%s5213_s1 + $0x8] sm:$0xff] }
  0x2e   :  { %v3007_v8 = vld [vmem:[#allocation3 + $0x20] sm:$0xf]  ;;  %v4404_v9 = vld [vmem:[#allocation3 + $0x2c] sm:$0xf0]  ;;  %v3408_v11 = vor.u32 %v4504_v4, %v3407_v3  ;;  %915 = vmatpush.bf16.msra.mxu1 %v3152_v6  ;;  %v3217_v52 = vld [vmem:[#allocation3 + $0x1d0] sm:$0xf0]  ;;  %v4979_v61 = vpack.c.bf16 %v110_v50, %v110_v50 }
  0x2f   :  { %v3135_v10 = vld [vmem:[#allocation3 + $0x120] sm:$0xf]  ;;  %v4436_v12 = vld [vmem:[#allocation3 + $0x12c] sm:$0xf0]  ;;  %v3008_v17 = vor.u32 %v4404_v9, %v3007_v8  ;;  %928 = vmatpush.bf16.msra.mxu2 %v3280_v7  ;;  %v4486_v53 = vld [vmem:[#allocation3 + $0x2c4] sm:$0xf]  ;;  %v3220_v62 = vor.u32 %v4454_v49, %v3217_v52 }
  0x30   :  { %v3263_v13 = vld [vmem:[#allocation3 + $0x220] sm:$0xf]  ;;  %v4468_v14 = vld [vmem:[#allocation3 + $0x22c] sm:$0xf0]  ;;  %v3136_v20 = vor.u32 %v4436_v12, %v3135_v10  ;;  %941 = vmatpush.bf16.msra.mxu3 %v3408_v11  ;;  %v3345_v54 = vld [vmem:[#allocation3 + $0x2d0] sm:$0xf0] }
  0x31   :  { %v3391_v15 = vld [vmem:[#allocation3 + $0x320] sm:$0xf]  ;;  %v4500_v16 = vld [vmem:[#allocation3 + $0x32c] sm:$0xf0]  ;;  %v3264_v21 = vor.u32 %v4468_v14, %v3263_v13  ;;  %903 = vmatpush.bf16.msra.mxu0 %v3008_v17  ;;  %v4518_v56 = vld [vmem:[#allocation3 + $0x3c4] sm:$0xf]  ;;  %v3348_v63 = vor.u32 %v4486_v53, %v3345_v54 }
  0x32   :  { %v2991_v18 = vld [vmem:[#allocation3] sm:$0xf]  ;;  %v4400_v19 = vld [vmem:[#allocation3 + $0xc] sm:$0xf0]  ;;  %v3392_v25 = vor.u32 %v4500_v16, %v3391_v15  ;;  %916 = vmatpush.bf16.msra.mxu1 %v3136_v20  ;;  %v3473_v57 = vld [vmem:[#allocation3 + $0x3d0] sm:$0xf0] }
  0x33   :  { %v3119_v22 = vld [vmem:[#allocation3 + $0x100] sm:$0xf]  ;;  %v4432_v23 = vld [vmem:[#allocation3 + $0x10c] sm:$0xf0]  ;;  %v2992_v32 = vor.u32 %v4400_v19, %v2991_v18  ;;  %929 = vmatpush.bf16.msra.mxu2 %v3264_v21  ;;  %v4418_v0 = vld [vmem:[#allocation3 + $0xa4] sm:$0xf]  ;;  %v3476_v3 = vor.u32 %v4518_v56, %v3473_v57 }
  0x34   :  { %v3247_v24 = vld [vmem:[#allocation3 + $0x200] sm:$0xf]  ;;  %v4464_v26 = vld [vmem:[#allocation3 + $0x20c] sm:$0xf0]  ;;  %v3120_v36 = vor.u32 %v4432_v23, %v3119_v22  ;;  %942 = vmatpush.bf16.msra.mxu3 %v3392_v25  ;;  %v3073_v1 = vld [vmem:[#allocation3 + $0xb0] sm:$0xf0] }
  0x35   :  { %v3375_v27 = vld [vmem:[#allocation3 + $0x300] sm:$0xf]  ;;  %v4496_v28 = vld [vmem:[#allocation3 + $0x30c] sm:$0xf0]  ;;  %v3248_v37 = vor.u32 %v4464_v26, %v3247_v24  ;;  %904 = vmatpush.bf16.msra.mxu0 %v2992_v32  ;;  %v4450_v2 = vld [vmem:[#allocation3 + $0x1a4] sm:$0xf]  ;;  %v3076_v9 = vor.u32 %v4418_v0, %v3073_v1 }
  0x36   :  { %v111_v40 = vld [vmem:[%s5213_s1 + $0x10] sm:$0xff]  ;;  %v3376_v41 = vor.u32 %v4496_v28, %v3375_v27  ;;  %v109_v44 = vld [vmem:[%s5213_s1] sm:$0xff]  ;;  %917 = vmatpush.bf16.msra.mxu1 %v3120_v36 }
  0x37   :  { %v4973_v55 = vpack.c.bf16 %v111_v40, %v111_v40  ;;  %930 = vmatpush.bf16.msra.mxu2 %v3248_v37  ;;  %v4975_v58 = vpack.c.bf16 %v109_v44, %v109_v44  ;;  %v3201_v4 = vld [vmem:[#allocation3 + $0x1b0] sm:$0xf0]  ;;  %v4482_v5 = vld [vmem:[#allocation3 + $0x2a4] sm:$0xf] }
  0x38   :  { %943 = vmatpush.bf16.msra.mxu3 %v3376_v41  ;;  %v3329_v6 = vld [vmem:[#allocation3 + $0x2b0] sm:$0xf0]  ;;  %v4514_v7 = vld [vmem:[#allocation3 + $0x3a4] sm:$0xf]  ;;  %v3204_v10 = vor.u32 %v4450_v2, %v3201_v4 }
  0x39   :  { %949 = vmatpush.bf16.msrb.mxu0 %v3108_v42  ;;  %v3457_v8 = vld [vmem:[#allocation3 + $0x3b0] sm:$0xf0]  ;;  %918 = vmatmul.bf16.vlgmr.msra.gmra.mxu1 %v4979_v61  ;;  %v3332_v11 = vor.u32 %v4482_v5, %v3329_v6  ;;  %v4414_v12 = vld [vmem:[#allocation3 + $0x84] sm:$0xf] }
  0x3a   :  { %962 = vmatpush.bf16.msrb.mxu1 %v3236_v46  ;;  %931 = vmatmul.bf16.vlgmr.msra.gmra.mxu2 %v4973_v55  ;;  %v3057_v13 = vld [vmem:[#allocation3 + $0x90] sm:$0xf0]  ;;  %v4446_v14 = vld [vmem:[#allocation3 + $0x184] sm:$0xf]  ;;  %v3460_v15 = vor.u32 %v4514_v7, %v3457_v8 }
  0x3b   :  { %975 = vmatpush.bf16.msrb.mxu2 %v3364_v47  ;;  %905 = vmatmul.bf16.vlgmr.msra.gmra.mxu0 %v4975_v58  ;;  %v3185_v16 = vld [vmem:[#allocation3 + $0x190] sm:$0xf0]  ;;  %v4478_v17 = vld [vmem:[#allocation3 + $0x284] sm:$0xf]  ;;  %v3060_v21 = vor.u32 %v4414_v12, %v3057_v13  ;;  %v4461_v13 = vld [vmem:[#allocation3 + $0x1f4] sm:$0xf0] }
  0x3c   :  { %988 = vmatpush.bf16.msrb.mxu3 %v3492_v51  ;;  %v3313_v18 = vld [vmem:[#allocation3 + $0x290] sm:$0xf0]  ;;  %v4510_v19 = vld [vmem:[#allocation3 + $0x384] sm:$0xf]  ;;  %v3188_v22 = vor.u32 %v4446_v14, %v3185_v16  ;;  %v3367_v14 = vld [vmem:[#allocation3 + $0x2e8] sm:$0xf] }
  0x3d   :  { %944 = vmatmul.bf16.vlgmr.msra.gmra.mxu3 %v4977_v59  ;;  %950 = vmatpush.bf16.msrb.mxu0 %v3092_v60  ;;  %v3441_v20 = vld [vmem:[#allocation3 + $0x390] sm:$0xf0]  ;;  %v3316_v23 = vor.u32 %v4478_v17, %v3313_v18  ;;  %v4410_v24 = vld [vmem:[#allocation3 + $0x64] sm:$0xf]  ;;  %v3495_v18 = vld [vmem:[#allocation3 + $0x3e8] sm:$0xf] }
  0x3e   :  { %963 = vmatpush.bf16.msrb.mxu1 %v3220_v62  ;;  %v3041_v25 = vld [vmem:[#allocation3 + $0x70] sm:$0xf0]  ;;  %v4442_v26 = vld [vmem:[#allocation3 + $0x164] sm:$0xf]  ;;  %v3444_v27 = vor.u32 %v4510_v19, %v3441_v20  ;;  %v4525_v19 = vld [vmem:[#allocation3 + $0x3f4] sm:$0xf0] }
  0x3f   :  { %976 = vmatpush.bf16.msrb.mxu2 %v3348_v63  ;;  %v3169_v28 = vld [vmem:[#allocation3 + $0x170] sm:$0xf0]  ;;  %v4474_v29 = vld [vmem:[#allocation3 + $0x264] sm:$0xf]  ;;  %v3044_v33 = vor.u32 %v4410_v24, %v3041_v25  ;;  %v3095_v24 = vld [vmem:[#allocation3 + $0xc8] sm:$0xf] }
  0x40   :  { %989 = vmatpush.bf16.msrb.mxu3 %v3476_v3  ;;  %v3297_v30 = vld [vmem:[#allocation3 + $0x270] sm:$0xf0]  ;;  %v4506_v31 = vld [vmem:[#allocation3 + $0x364] sm:$0xf]  ;;  %v3172_v34 = vor.u32 %v4442_v26, %v3169_v28  ;;  %v4425_v25 = vld [vmem:[#allocation3 + $0xd4] sm:$0xf0] }
  0x41   :  { %951 = vmatpush.bf16.msrb.mxu0 %v3076_v9  ;;  %v3425_v32 = vld [vmem:[#allocation3 + $0x370] sm:$0xf0]  ;;  %v3300_v35 = vor.u32 %v4474_v29, %v3297_v30  ;;  %v4406_v36 = vld [vmem:[#allocation3 + $0x44] sm:$0xf]  ;;  %v3111_v9 = vld [vmem:[#allocation3 + $0xe8] sm:$0xf] }
  0x42   :  { %964 = vmatpush.bf16.msrb.mxu1 %v3204_v10  ;;  %v3025_v37 = vld [vmem:[#allocation3 + $0x50] sm:$0xf0]  ;;  %v4438_v38 = vld [vmem:[#allocation3 + $0x144] sm:$0xf]  ;;  %v3428_v39 = vor.u32 %v4506_v31, %v3425_v32  ;;  %v4429_v10 = vld [vmem:[#allocation3 + $0xf4] sm:$0xf0] }
  0x43   :  { %977 = vmatpush.bf16.msrb.mxu2 %v3332_v11  ;;  %v3153_v40 = vld [vmem:[#allocation3 + $0x150] sm:$0xf0]  ;;  %v4470_v41 = vld [vmem:[#allocation3 + $0x244] sm:$0xf]  ;;  %v3028_v45 = vor.u32 %v4406_v36, %v3025_v37  ;;  %v3239_v11 = vld [vmem:[#allocation3 + $0x1e8] sm:$0xf] }
  0x44   :  { %990 = vmatpush.bf16.msrb.mxu3 %v3460_v15  ;;  %v3281_v42 = vld [vmem:[#allocation3 + $0x250] sm:$0xf0]  ;;  %v4502_v43 = vld [vmem:[#allocation3 + $0x344] sm:$0xf]  ;;  %v3156_v46 = vor.u32 %v4438_v38, %v3153_v40  ;;  %v4493_v15 = vld [vmem:[#allocation3 + $0x2f4] sm:$0xf0] }
  0x45   :  { %952 = vmatpush.bf16.msrb.mxu0 %v3060_v21  ;;  %v3409_v44 = vld [vmem:[#allocation3 + $0x350] sm:$0xf0]  ;;  %v3284_v47 = vor.u32 %v4470_v41, %v3281_v42  ;;  %v4402_v48 = vld [vmem:[#allocation3 + $0x24] sm:$0xf]  ;;  %v3112_v21 = vor.u32 %v4429_v10, %v3111_v9  ;;  %v3223_v26 = vld [vmem:[#allocation3 + $0x1c8] sm:$0xf] }
  0x46   :  { %965 = vmatpush.bf16.msrb.mxu1 %v3188_v22  ;;  %v3009_v49 = vld [vmem:[#allocation3 + $0x30] sm:$0xf0]  ;;  %v4434_v50 = vld [vmem:[#allocation3 + $0x124] sm:$0xf]  ;;  %v3412_v51 = vor.u32 %v4502_v43, %v3409_v44  ;;  %v3240_v22 = vor.u32 %v4461_v13, %v3239_v11  ;;  %v4457_v28 = vld [vmem:[#allocation3 + $0x1d4] sm:$0xf0] }
  0x47   :  { %978 = vmatpush.bf16.msrb.mxu2 %v3316_v23  ;;  %v3137_v52 = vld [vmem:[#allocation3 + $0x130] sm:$0xf0]  ;;  %v4466_v53 = vld [vmem:[#allocation3 + $0x224] sm:$0xf]  ;;  %v3012_v60 = vor.u32 %v4402_v48, %v3009_v49  ;;  %v3368_v23 = vor.u32 %v4493_v15, %v3367_v14  ;;  %v3351_v29 = vld [vmem:[#allocation3 + $0x2c8] sm:$0xf] }
  0x48   :  { %991 = vmatpush.bf16.msrb.mxu3 %v3444_v27  ;;  %v3265_v54 = vld [vmem:[#allocation3 + $0x230] sm:$0xf0]  ;;  %v4498_v56 = vld [vmem:[#allocation3 + $0x324] sm:$0xf]  ;;  %v3140_v0 = vor.u32 %v4434_v50, %v3137_v52  ;;  %v3496_v27 = vor.u32 %v4525_v19, %v3495_v18  ;;  %v4489_v30 = vld [vmem:[#allocation3 + $0x2d4] sm:$0xf0] }
  0x49   :  { %953 = vmatpush.bf16.msrb.mxu0 %v3044_v33  ;;  %v3393_v57 = vld [vmem:[#allocation3 + $0x330] sm:$0xf0]  ;;  %v4398_v62 = vld [vmem:[#allocation3 + $0x4] sm:$0xf]  ;;  %v3268_v1 = vor.u32 %v4466_v53, %v3265_v54  ;;  %v3479_v31 = vld [vmem:[#allocation3 + $0x3c8] sm:$0xf]  ;;  %v3096_v33 = vor.u32 %v4425_v25, %v3095_v24 }
  0x4a   :  { %966 = vmatpush.bf16.msrb.mxu1 %v3172_v34  ;;  %v2993_v63 = vld [vmem:[#allocation3 + $0x10] sm:$0xf0]  ;;  %v4430_v2 = vld [vmem:[#allocation3 + $0x104] sm:$0xf]  ;;  %v3396_v5 = vor.u32 %v4498_v56, %v3393_v57  ;;  %v4521_v32 = vld [vmem:[#allocation3 + $0x3d4] sm:$0xf0]  ;;  %v3224_v34 = vor.u32 %v4457_v28, %v3223_v26 }
  0x4b   :  { %979 = vmatpush.bf16.msrb.mxu2 %v3300_v35  ;;  %v3121_v3 = vld [vmem:[#allocation3 + $0x110] sm:$0xf0]  ;;  %v4462_v4 = vld [vmem:[#allocation3 + $0x204] sm:$0xf]  ;;  %v2996_v12 = vor.u32 %v4398_v62, %v2993_v63  ;;  %v3352_v35 = vor.u32 %v4489_v30, %v3351_v29  ;;  %v3079_v36 = vld [vmem:[#allocation3 + $0xa8] sm:$0xf] }
  0x4c   :  { %992 = vmatpush.bf16.msrb.mxu3 %v3428_v39  ;;  %v3249_v6 = vld [vmem:[#allocation3 + $0x210] sm:$0xf0]  ;;  %v4494_v7 = vld [vmem:[#allocation3 + $0x304] sm:$0xf]  ;;  %v3124_v16 = vor.u32 %v4430_v2, %v3121_v3  ;;  %v4421_v37 = vld [vmem:[#allocation3 + $0xb4] sm:$0xf0]  ;;  %v3480_v39 = vor.u32 %v4521_v32, %v3479_v31 }
  0x4d   :  { %954 = vmatpush.bf16.msrb.mxu0 %v3028_v45  ;;  %v3377_v8 = vld [vmem:[#allocation3 + $0x310] sm:$0xf0]  ;;  %v3252_v17 = vor.u32 %v4462_v4, %v3249_v6  ;;  %v3207_v38 = vld [vmem:[#allocation3 + $0x1a8] sm:$0xf]  ;;  %v4453_v40 = vld [vmem:[#allocation3 + $0x1b4] sm:$0xf0]  ;;  %v3080_v45 = vor.u32 %v4421_v37, %v3079_v36 }
  0x4e   :  { %967 = vmatpush.bf16.msrb.mxu1 %v3156_v46  ;;  %v3380_v20 = vor.u32 %v4494_v7, %v3377_v8  ;;  %v3335_v41 = vld [vmem:[#allocation3 + $0x2a8] sm:$0xf]  ;;  %v4485_v42 = vld [vmem:[#allocation3 + $0x2b4] sm:$0xf0]  ;;  %v3208_v46 = vor.u32 %v4453_v40, %v3207_v38 }
  0x4f   :  { %980 = vmatpush.bf16.msrb.mxu2 %v3284_v47  ;;  %v3463_v43 = vld [vmem:[#allocation3 + $0x3a8] sm:$0xf]  ;;  %v4517_v44 = vld [vmem:[#allocation3 + $0x3b4] sm:$0xf0]  ;;  %v3336_v47 = vor.u32 %v4485_v42, %v3335_v41 }
  0x50   :  { %993 = vmatpush.bf16.msrb.mxu3 %v3412_v51  ;;  %v3063_v48 = vld [vmem:[#allocation3 + $0x88] sm:$0xf]  ;;  %v4417_v49 = vld [vmem:[#allocation3 + $0x94] sm:$0xf0]  ;;  %v3464_v51 = vor.u32 %v4517_v44, %v3463_v43 }
  0x51   :  { %955 = vmatpush.bf16.msrb.mxu0 %v3012_v60  ;;  %v3191_v50 = vld [vmem:[#allocation3 + $0x188] sm:$0xf]  ;;  %v4449_v52 = vld [vmem:[#allocation3 + $0x194] sm:$0xf0]  ;;  %v3064_v60 = vor.u32 %v4417_v49, %v3063_v48  ;;  %v3241_v49 = vld [vmem:[#allocation3 + $0x1f8] sm:$0xf0] }
  0x52   :  { %968 = vmatpush.bf16.msrb.mxu1 %v3140_v0  ;;  %v3319_v53 = vld [vmem:[#allocation3 + $0x288] sm:$0xf]  ;;  %v4481_v54 = vld [vmem:[#allocation3 + $0x294] sm:$0xf0]  ;;  %v3192_v62 = vor.u32 %v4449_v52, %v3191_v50  ;;  %v4491_v50 = vld [vmem:[#allocation3 + $0x2ec] sm:$0xf] }
  0x53   :  { %981 = vmatpush.bf16.msrb.mxu2 %v3268_v1  ;;  %v3447_v56 = vld [vmem:[#allocation3 + $0x388] sm:$0xf]  ;;  %v4513_v57 = vld [vmem:[#allocation3 + $0x394] sm:$0xf0]  ;;  %v3320_v63 = vor.u32 %v4481_v54, %v3319_v53  ;;  %v4523_v54 = vld [vmem:[#allocation3 + $0x3ec] sm:$0xf] }
  0x54   :  { %994 = vmatpush.bf16.msrb.mxu3 %v3396_v5  ;;  %v3047_v0 = vld [vmem:[#allocation3 + $0x68] sm:$0xf]  ;;  %v4413_v1 = vld [vmem:[#allocation3 + $0x74] sm:$0xf0]  ;;  %v3448_v3 = vor.u32 %v4513_v57, %v3447_v56  ;;  %v3497_v56 = vld [vmem:[#allocation3 + $0x3f8] sm:$0xf0] }
  0x55   :  { %956 = vmatpush.bf16.msrb.mxu0 %v2996_v12  ;;  %v3175_v2 = vld [vmem:[#allocation3 + $0x168] sm:$0xf]  ;;  %v4445_v4 = vld [vmem:[#allocation3 + $0x174] sm:$0xf0]  ;;  %v3048_v9 = vor.u32 %v4413_v1, %v3047_v0  ;;  %v4423_v0 = vld [vmem:[#allocation3 + $0xcc] sm:$0xf] }
  0x56   :  { %969 = vmatpush.bf16.msrb.mxu1 %v3124_v16  ;;  %v3303_v5 = vld [vmem:[#allocation3 + $0x268] sm:$0xf]  ;;  %v4477_v6 = vld [vmem:[#allocation3 + $0x274] sm:$0xf0]  ;;  %v3176_v10 = vor.u32 %v4445_v4, %v3175_v2  ;;  %v3097_v1 = vld [vmem:[#allocation3 + $0xd8] sm:$0xf0] }
  0x57   :  { %982 = vmatpush.bf16.msrb.mxu2 %v3252_v17  ;;  %v3431_v7 = vld [vmem:[#allocation3 + $0x368] sm:$0xf]  ;;  %v4509_v8 = vld [vmem:[#allocation3 + $0x374] sm:$0xf0]  ;;  %v3304_v11 = vor.u32 %v4477_v6, %v3303_v5  ;;  %v4455_v2 = vld [vmem:[#allocation3 + $0x1cc] sm:$0xf] }
  0x58   :  { %995 = vmatpush.bf16.msrb.mxu3 %v3380_v20  ;;  %957 = vmatmul.bf16.vlgmr.msrb.gmra.mxu0 %v4975_v58  ;;  %v3031_v12 = vld [vmem:[#allocation3 + $0x48] sm:$0xf]  ;;  %v4409_v13 = vld [vmem:[#allocation3 + $0x54] sm:$0xf0]  ;;  %v3432_v15 = vor.u32 %v4509_v8, %v3431_v7  ;;  %v3225_v4 = vld [vmem:[#allocation3 + $0x1d8] sm:$0xf0] }
  0x59   :  { %1001 = vmatpush.bf16.msra.mxu0 %v3112_v21  ;;  %970 = vmatmul.bf16.vlgmr.msrb.gmra.mxu1 %v4979_v61  ;;  %v3159_v14 = vld [vmem:[#allocation3 + $0x148] sm:$0xf]  ;;  %v4441_v16 = vld [vmem:[#allocation3 + $0x154] sm:$0xf0]  ;;  %v3032_v21 = vor.u32 %v4409_v13, %v3031_v12  ;;  %v4487_v5 = vld [vmem:[#allocation3 + $0x2cc] sm:$0xf] }
  0x5a   :  { %1014 = vmatpush.bf16.msra.mxu1 %v3240_v22  ;;  %983 = vmatmul.bf16.vlgmr.msrb.gmra.mxu2 %v4973_v55  ;;  %v3287_v17 = vld [vmem:[#allocation3 + $0x248] sm:$0xf]  ;;  %v4473_v18 = vld [vmem:[#allocation3 + $0x254] sm:$0xf0]  ;;  %v3160_v22 = vor.u32 %v4441_v16, %v3159_v14  ;;  %v3353_v6 = vld [vmem:[#allocation3 + $0x2d8] sm:$0xf0] }
  0x5b   :  { %1027 = vmatpush.bf16.msra.mxu2 %v3368_v23  ;;  %996 = vmatmul.bf16.vlgmr.msrb.gmra.mxu3 %v4977_v59  ;;  %v3415_v19 = vld [vmem:[#allocation3 + $0x348] sm:$0xf]  ;;  %v4505_v20 = vld [vmem:[#allocation3 + $0x354] sm:$0xf0]  ;;  %v3288_v23 = vor.u32 %v4473_v18, %v3287_v17  ;;  %v4519_v7 = vld [vmem:[#allocation3 + $0x3cc] sm:$0xf] }
  0x5c   :  { %1040 = vmatpush.bf16.msra.mxu3 %v3496_v27  ;;  %v3015_v24 = vld [vmem:[#allocation3 + $0x28] sm:$0xf]  ;;  %v4405_v25 = vld [vmem:[#allocation3 + $0x34] sm:$0xf0]  ;;  %v3416_v27 = vor.u32 %v4505_v20, %v3415_v19  ;;  %v3481_v8 = vld [vmem:[#allocation3 + $0x3d8] sm:$0xf0] }
  0x5d   :  { %1002 = vmatpush.bf16.msra.mxu0 %v3096_v33  ;;  %v3143_v26 = vld [vmem:[#allocation3 + $0x128] sm:$0xf]  ;;  %v4437_v28 = vld [vmem:[#allocation3 + $0x134] sm:$0xf0]  ;;  %v3016_v33 = vor.u32 %v4405_v25, %v3015_v24  ;;  %v4419_v12 = vld [vmem:[#allocation3 + $0xac] sm:$0xf] }
  0x5e   :  { %1015 = vmatpush.bf16.msra.mxu1 %v3224_v34  ;;  %v3271_v29 = vld [vmem:[#allocation3 + $0x228] sm:$0xf]  ;;  %v4469_v30 = vld [vmem:[#allocation3 + $0x234] sm:$0xf0]  ;;  %v3144_v36 = vor.u32 %v4437_v28, %v3143_v26  ;;  %v3081_v13 = vld [vmem:[#allocation3 + $0xb8] sm:$0xf0] }
  0x5f   :  { %1028 = vmatpush.bf16.msra.mxu2 %v3352_v35  ;;  %v3399_v31 = vld [vmem:[#allocation3 + $0x328] sm:$0xf]  ;;  %v4501_v32 = vld [vmem:[#allocation3 + $0x334] sm:$0xf0]  ;;  %v3272_v37 = vor.u32 %v4469_v30, %v3271_v29  ;;  %v4451_v14 = vld [vmem:[#allocation3 + $0x1ac] sm:$0xf] }
  0x60   :  { %1041 = vmatpush.bf16.msra.mxu3 %v3480_v39  ;;  %v2999_v34 = vld [vmem:[#allocation3 + $0x8] sm:$0xf]  ;;  %v4401_v35 = vld [vmem:[#allocation3 + $0x14] sm:$0xf0]  ;;  %v3400_v41 = vor.u32 %v4501_v32, %v3399_v31  ;;  %v3209_v16 = vld [vmem:[#allocation3 + $0x1b8] sm:$0xf0] }
  0x61   :  { %1003 = vmatpush.bf16.msra.mxu0 %v3080_v45  ;;  %v3127_v38 = vld [vmem:[#allocation3 + $0x108] sm:$0xf]  ;;  %v4433_v39 = vld [vmem:[#allocation3 + $0x114] sm:$0xf0]  ;;  %v4427_v45 = vld [vmem:[#allocation3 + $0xec] sm:$0xf]  ;;  %v3000_v48 = vor.u32 %v4401_v35, %v2999_v34 }
  0x62   :  { %1016 = vmatpush.bf16.msra.mxu1 %v3208_v46  ;;  %v3255_v40 = vld [vmem:[#allocation3 + $0x208] sm:$0xf]  ;;  %v4465_v42 = vld [vmem:[#allocation3 + $0x214] sm:$0xf0]  ;;  %v3113_v46 = vld [vmem:[#allocation3 + $0xf8] sm:$0xf0]  ;;  %v3128_v52 = vor.u32 %v4433_v39, %v3127_v38 }
  0x63   :  { %1029 = vmatpush.bf16.msra.mxu2 %v3336_v47  ;;  %v3383_v43 = vld [vmem:[#allocation3 + $0x308] sm:$0xf]  ;;  %v4497_v44 = vld [vmem:[#allocation3 + $0x314] sm:$0xf0]  ;;  %v4459_v47 = vld [vmem:[#allocation3 + $0x1ec] sm:$0xf]  ;;  %v3256_v53 = vor.u32 %v4465_v42, %v3255_v40 }
  0x64   :  { %1042 = vmatpush.bf16.msra.mxu3 %v3464_v51  ;;  %v3369_v51 = vld [vmem:[#allocation3 + $0x2f8] sm:$0xf0]  ;;  %v3384_v57 = vor.u32 %v4497_v44, %v3383_v43  ;;  %v4483_v17 = vld [vmem:[#allocation3 + $0x2ac] sm:$0xf] }
  0x65   :  { %1004 = vmatpush.bf16.msra.mxu0 %v3064_v60  ;;  %v3116_v60 = vor.u32 %v4427_v45, %v3113_v46  ;;  %v3337_v18 = vld [vmem:[#allocation3 + $0x2b8] sm:$0xf0]  ;;  %v4515_v19 = vld [vmem:[#allocation3 + $0x3ac] sm:$0xf] }
  0x66   :  { %1017 = vmatpush.bf16.msra.mxu1 %v3192_v62  ;;  %v3244_v62 = vor.u32 %v4459_v47, %v3241_v49  ;;  %v3465_v20 = vld [vmem:[#allocation3 + $0x3b8] sm:$0xf0]  ;;  %v4415_v24 = vld [vmem:[#allocation3 + $0x8c] sm:$0xf] }
  0x67   :  { %1030 = vmatpush.bf16.msra.mxu2 %v3320_v63  ;;  %v3372_v63 = vor.u32 %v4491_v50, %v3369_v51  ;;  %v3065_v25 = vld [vmem:[#allocation3 + $0x98] sm:$0xf0]  ;;  %v4447_v26 = vld [vmem:[#allocation3 + $0x18c] sm:$0xf] }
  0x68   :  { %1043 = vmatpush.bf16.msra.mxu3 %v3448_v3  ;;  %v3500_v3 = vor.u32 %v4523_v54, %v3497_v56  ;;  %v3193_v28 = vld [vmem:[#allocation3 + $0x198] sm:$0xf0]  ;;  %v4479_v29 = vld [vmem:[#allocation3 + $0x28c] sm:$0xf] }
  0x69   :  { %1005 = vmatpush.bf16.msra.mxu0 %v3048_v9  ;;  %v3100_v9 = vor.u32 %v4423_v0, %v3097_v1  ;;  %v3321_v30 = vld [vmem:[#allocation3 + $0x298] sm:$0xf0]  ;;  %v4511_v31 = vld [vmem:[#allocation3 + $0x38c] sm:$0xf]  ;;  %v3196_v34 = vor.u32 %v4447_v26, %v3193_v28 }
  0x6a   :  { %1018 = vmatpush.bf16.msra.mxu1 %v3176_v10  ;;  %v3228_v10 = vor.u32 %v4455_v2, %v3225_v4  ;;  %v3449_v32 = vld [vmem:[#allocation3 + $0x398] sm:$0xf0]  ;;  %v3324_v35 = vor.u32 %v4479_v29, %v3321_v30  ;;  %v4443_v38 = vld [vmem:[#allocation3 + $0x16c] sm:$0xf]  ;;  %v3551_v30 = vld [vmem:[#allocation5 + $0x60] sm:$0xf] }
  0x6b   :  { %1031 = vmatpush.bf16.msra.mxu2 %v3304_v11  ;;  %v3356_v11 = vor.u32 %v4487_v5, %v3353_v6  ;;  %v3452_v39 = vor.u32 %v4511_v31, %v3449_v32  ;;  %v3177_v40 = vld [vmem:[#allocation3 + $0x178] sm:$0xf0]  ;;  %v4507_v43 = vld [vmem:[#allocation3 + $0x36c] sm:$0xf]  ;;  %v4539_v31 = vld [vmem:[#allocation5 + $0x64] sm:$0xf0] }
  0x6c   :  { %1044 = vmatpush.bf16.msra.mxu3 %v3432_v15  ;;  %v3484_v15 = vor.u32 %v4519_v7, %v3481_v8  ;;  %v3305_v42 = vld [vmem:[#allocation3 + $0x278] sm:$0xf0]  ;;  %v3180_v46 = vor.u32 %v4443_v38, %v3177_v40  ;;  %v4439_v50 = vld [vmem:[#allocation3 + $0x14c] sm:$0xf]  ;;  %v4553_v40 = vld [vmem:[#allocation5 + $0xd4] sm:$0xf0] }
  0x6d   :  { %1006 = vmatpush.bf16.msra.mxu0 %v3032_v21  ;;  %v3084_v21 = vor.u32 %v4419_v12, %v3081_v13  ;;  %v3433_v44 = vld [vmem:[#allocation3 + $0x378] sm:$0xf0]  ;;  %v4503_v56 = vld [vmem:[#allocation3 + $0x34c] sm:$0xf] }
  0x6e   :  { %1019 = vmatpush.bf16.msra.mxu1 %v3160_v22  ;;  %v3212_v22 = vor.u32 %v4451_v14, %v3209_v16  ;;  %v3033_v49 = vld [vmem:[#allocation3 + $0x58] sm:$0xf0]  ;;  %v3436_v51 = vor.u32 %v4507_v43, %v3433_v44  ;;  %v4403_v0 = vld [vmem:[#allocation3 + $0x2c] sm:$0xf]  ;;  %v4535_v43 = vld [vmem:[#allocation5 + $0x44] sm:$0xf0] }
  0x6f   :  { %1032 = vmatpush.bf16.msra.mxu2 %v3288_v23  ;;  %v3340_v23 = vor.u32 %v4483_v17, %v3337_v18  ;;  %v3289_v54 = vld [vmem:[#allocation3 + $0x258] sm:$0xf0]  ;;  %v4435_v2 = vld [vmem:[#allocation3 + $0x12c] sm:$0xf] }
  0x70   :  { %1045 = vmatpush.bf16.msra.mxu3 %v3416_v27  ;;  %v3468_v27 = vor.u32 %v4515_v19, %v3465_v20  ;;  %v3017_v1 = vld [vmem:[#allocation3 + $0x38] sm:$0xf0]  ;;  %v4467_v5 = vld [vmem:[#allocation3 + $0x22c] sm:$0xf] }
  0x71   :  { %1007 = vmatpush.bf16.msra.mxu0 %v3016_v33  ;;  %v3068_v33 = vor.u32 %v4415_v24, %v3065_v25  ;;  %v3145_v4 = vld [vmem:[#allocation3 + $0x138] sm:$0xf0]  ;;  %v4499_v7 = vld [vmem:[#allocation3 + $0x32c] sm:$0xf]  ;;  %v3623_v24 = vld [vmem:[#allocation5 + $0xf0] sm:$0xf] }
  0x72   :  { %1020 = vmatpush.bf16.msra.mxu1 %v3144_v36  ;;  %v4411_v36 = vld [vmem:[#allocation3 + $0x6c] sm:$0xf]  ;;  %v3273_v6 = vld [vmem:[#allocation3 + $0x238] sm:$0xf0]  ;;  %v4557_v25 = vld [vmem:[#allocation5 + $0xf4] sm:$0xf0] }
  0x73   :  { %1033 = vmatpush.bf16.msra.mxu2 %v3272_v37  ;;  %v3049_v37 = vld [vmem:[#allocation3 + $0x78] sm:$0xf0]  ;;  %v3276_v12 = vor.u32 %v4467_v5, %v3273_v6  ;;  %v4431_v14 = vld [vmem:[#allocation3 + $0x10c] sm:$0xf]  ;;  %v3624_v32 = vor.u32 %v4557_v25, %v3623_v24 }
  0x74   :  { %1046 = vmatpush.bf16.msra.mxu3 %v3400_v41  ;;  %v4475_v41 = vld [vmem:[#allocation3 + $0x26c] sm:$0xf]  ;;  %v3052_v45 = vor.u32 %v4411_v36, %v3049_v37  ;;  %v3401_v8 = vld [vmem:[#allocation3 + $0x338] sm:$0xf0]  ;;  %v3543_v36 = vld [vmem:[#allocation5 + $0x50] sm:$0xf] }
  0x75   :  { %1008 = vmatpush.bf16.msra.mxu0 %v3000_v48  ;;  %v3308_v47 = vor.u32 %v4475_v41, %v3305_v42  ;;  %v4407_v48 = vld [vmem:[#allocation3 + $0x4c] sm:$0xf]  ;;  %v3001_v13 = vld [vmem:[#allocation3 + $0x18] sm:$0xf0]  ;;  %v3404_v16 = vor.u32 %v4499_v7, %v3401_v8  ;;  %v4537_v37 = vld [vmem:[#allocation5 + $0x54] sm:$0xf0] }
  0x76   :  { %1021 = vmatpush.bf16.msra.mxu1 %v3128_v52  ;;  %v3161_v52 = vld [vmem:[#allocation3 + $0x158] sm:$0xf0]  ;;  %v4463_v17 = vld [vmem:[#allocation3 + $0x20c] sm:$0xf]  ;;  %v3544_v41 = vor.u32 %v4537_v37, %v3543_v36  ;;  %v3535_v42 = vld [vmem:[#allocation5 + $0x40] sm:$0xf] }
  0x77   :  { %1034 = vmatpush.bf16.msra.mxu2 %v3256_v53  ;;  %v4471_v53 = vld [vmem:[#allocation3 + $0x24c] sm:$0xf]  ;;  %v3257_v18 = vld [vmem:[#allocation3 + $0x218] sm:$0xf0]  ;;  %v3567_v7 = vld [vmem:[#allocation5 + $0x80] sm:$0xf] }
  0x78   :  { %1047 = vmatpush.bf16.msra.mxu3 %v3384_v57  ;;  %1009 = vmatmul.bf16.vlgmr.msra.gmra.mxu0 %v4975_v58  ;;  %v3417_v57 = vld [vmem:[#allocation3 + $0x358] sm:$0xf0]  ;;  %v4495_v19 = vld [vmem:[#allocation3 + $0x30c] sm:$0xf]  ;;  %v4543_v8 = vld [vmem:[#allocation5 + $0x84] sm:$0xf0] }
  0x79   :  { %1053 = vmatpush.bf16.msrb.mxu0 %v3116_v60  ;;  %1022 = vmatmul.bf16.vlgmr.msra.gmra.mxu1 %v4979_v61  ;;  %v3036_v60 = vor.u32 %v4407_v48, %v3033_v49  ;;  %v3385_v20 = vld [vmem:[#allocation3 + $0x318] sm:$0xf0]  ;;  %v4533_v48 = vld [vmem:[#allocation5 + $0x34] sm:$0xf0]  ;;  %v3591_v49 = vld [vmem:[#allocation5 + $0xb0] sm:$0xf] }
  0x7a   :  { %1066 = vmatpush.bf16.msrb.mxu1 %v3244_v62  ;;  %1035 = vmatmul.bf16.vlgmr.msra.gmra.mxu2 %v4973_v55  ;;  %v3164_v62 = vor.u32 %v4439_v50, %v3161_v52  ;;  %v3388_v28 = vor.u32 %v4495_v19, %v3385_v20  ;;  %v3561_v6 = vld [vmem:[#allocation5 + $0x78] sm:$0xf0]  ;;  %v4554_v20 = vld [vmem:[#allocation5 + $0xe4] sm:$0xf] }
  0x7b   :  { %1079 = vmatpush.bf16.msrb.mxu2 %v3372_v63  ;;  %1048 = vmatmul.bf16.vlgmr.msra.gmra.mxu3 %v4977_v59  ;;  %v3292_v63 = vor.u32 %v4471_v53, %v3289_v54  ;;  %v3583_v53 = vld [vmem:[#allocation5 + $0xa0] sm:$0xf]  ;;  %v4547_v54 = vld [vmem:[#allocation5 + $0xa4] sm:$0xf0]  ;;  %v3545_v24 = vld [vmem:[#allocation5 + $0x58] sm:$0xf0] }
  0x7c   :  { %1092 = vmatpush.bf16.msrb.mxu3 %v3500_v3  ;;  %v3420_v3 = vor.u32 %v4503_v56, %v3417_v57  ;;  %v3511_v57 = vld [vmem:[#allocation5 + $0x10] sm:$0xf] }
  0x7d   :  { %1054 = vmatpush.bf16.msrb.mxu0 %v3100_v9  ;;  %v3020_v9 = vor.u32 %v4403_v0, %v3017_v1  ;;  %v4545_v0 = vld [vmem:[#allocation5 + $0x94] sm:$0xf0] }
  0x7e   :  { %1067 = vmatpush.bf16.msrb.mxu1 %v3228_v10  ;;  %v4399_v10 = vld [vmem:[#allocation3 + $0xc] sm:$0xf] }
  0x7f   :  { %1080 = vmatpush.bf16.msrb.mxu2 %v3356_v11  ;;  %v3148_v11 = vor.u32 %v4435_v2, %v3145_v4  ;;  %v3503_v2 = vld [vmem:[#allocation5] sm:$0xf]  ;;  %v4540_v4 = vld [vmem:[#allocation5 + $0x74] sm:$0xf] }
  0x80   :  { %1093 = vmatpush.bf16.msrb.mxu3 %v3484_v15  ;;  %v3129_v15 = vld [vmem:[#allocation3 + $0x118] sm:$0xf0] }
  0x81   :  { %1055 = vmatpush.bf16.msrb.mxu0 %v3084_v21  ;;  %v3559_v21 = vld [vmem:[#allocation5 + $0x70] sm:$0xf]  ;;  %v3132_v26 = vor.u32 %v4431_v14, %v3129_v15  ;;  %v3564_v14 = vor.u32 %v4540_v4, %v3561_v6  ;;  %v3568_v15 = vor.u32 %v4543_v8, %v3567_v7  ;;  %v3663_v4 = vld [vmem:[#allocation5 + $0x140] sm:$0xf]  ;;  %v4544_v8 = vld [vmem:[#allocation5 + $0x94] sm:$0xf] }
  0x82   :  { %1068 = vmatpush.bf16.msrb.mxu1 %v3212_v22  ;;  %v4541_v22 = vld [vmem:[#allocation5 + $0x74] sm:$0xf0] }
  0x83   :  { %1081 = vmatpush.bf16.msrb.mxu2 %v3340_v23  ;;  %v3004_v23 = vor.u32 %v4399_v10, %v3001_v13  ;;  %v3560_v29 = vor.u32 %v4541_v22, %v3559_v21  ;;  %v3625_v10 = vld [vmem:[#allocation5 + $0xf8] sm:$0xf0]  ;;  %v4573_v13 = vld [vmem:[#allocation5 + $0x174] sm:$0xf0]  ;;  %v3617_v21 = vld [vmem:[#allocation5 + $0xe8] sm:$0xf0] }
  0x84   :  { %1094 = vmatpush.bf16.msrb.mxu3 %v3468_v27  ;;  %v3260_v27 = vor.u32 %v4463_v17, %v3257_v18  ;;  %v4538_v17 = vld [vmem:[#allocation5 + $0x64] sm:$0xf]  ;;  %v3553_v18 = vld [vmem:[#allocation5 + $0x68] sm:$0xf0]  ;;  %v3620_v25 = vor.u32 %v4554_v20, %v3617_v21  ;;  %v4565_v20 = vld [vmem:[#allocation5 + $0x134] sm:$0xf0] }
  0x85   :  { %1056 = vmatpush.bf16.msrb.mxu0 %v3068_v33  ;;  %v3615_v33 = vld [vmem:[#allocation5 + $0xe0] sm:$0xf]  ;;  %v3556_v22 = vor.u32 %v4538_v17, %v3553_v18  ;;  %v3655_v17 = vld [vmem:[#allocation5 + $0x130] sm:$0xf] }
  0x86   :  { %1069 = vmatpush.bf16.msrb.mxu1 %v3196_v34  ;;  %v4555_v34 = vld [vmem:[#allocation5 + $0xe4] sm:$0xf0]  ;;  %v3871_v21 = vld [vmem:[#allocation7 + $0xe0] sm:$0xf] }
  0x87   :  { %1082 = vmatpush.bf16.msrb.mxu2 %v3324_v35  ;;  %v3552_v35 = vor.u32 %v4539_v31, %v3551_v30  ;;  %v3616_v38 = vor.u32 %v4555_v34, %v3615_v33  ;;  %v4534_v30 = vld [vmem:[#allocation5 + $0x44] sm:$0xf]  ;;  %v3537_v31 = vld [vmem:[#allocation5 + $0x48] sm:$0xf0] }
  0x88   :  { %1095 = vmatpush.bf16.msrb.mxu3 %v3452_v39  ;;  %v3607_v39 = vld [vmem:[#allocation5 + $0xd0] sm:$0xf]  ;;  %v4550_v34 = vld [vmem:[#allocation5 + $0xc4] sm:$0xf]  ;;  %v3540_v36 = vor.u32 %v4534_v30, %v3537_v31  ;;  %v4587_v30 = vld [vmem:[#allocation5 + $0x1e4] sm:$0xf0] }
  0x89   :  { %1057 = vmatpush.bf16.msrb.mxu0 %v3052_v45  ;;  %v3608_v44 = vor.u32 %v4553_v40, %v3607_v39  ;;  %v3599_v45 = vld [vmem:[#allocation5 + $0xc0] sm:$0xf]  ;;  %v3529_v39 = vld [vmem:[#allocation5 + $0x38] sm:$0xf0] }
  0x8a   :  { %1070 = vmatpush.bf16.msrb.mxu1 %v3180_v46  ;;  %v3536_v46 = vor.u32 %v4535_v43, %v3535_v42  ;;  %v3679_v43 = vld [vmem:[#allocation5 + $0x160] sm:$0xf] }
  0x8b   :  { %1083 = vmatpush.bf16.msrb.mxu2 %v3308_v47  ;;  %v3527_v47 = vld [vmem:[#allocation5 + $0x30] sm:$0xf] }
  0x8c   :  { %1096 = vmatpush.bf16.msrb.mxu3 %v3436_v51  ;;  %v3528_v50 = vor.u32 %v4533_v48, %v3527_v47  ;;  %v3519_v51 = vld [vmem:[#allocation5 + $0x20] sm:$0xf] }
  0x8d   :  { %1058 = vmatpush.bf16.msrb.mxu0 %v3036_v60  ;;  %v4529_v60 = vld [vmem:[#allocation5 + $0x14] sm:$0xf0] }
  0x8e   :  { %1071 = vmatpush.bf16.msrb.mxu1 %v3164_v62  ;;  %v3584_v62 = vor.u32 %v4547_v54, %v3583_v53  ;;  %v3512_v1 = vor.u32 %v4529_v60, %v3511_v57  ;;  %v3585_v57 = vld [vmem:[#allocation5 + $0xa8] sm:$0xf0] }
  0x8f   :  { %1084 = vmatpush.bf16.msrb.mxu2 %v3292_v63  ;;  %v3575_v63 = vld [vmem:[#allocation5 + $0x90] sm:$0xf] }
  0x90   :  { %1097 = vmatpush.bf16.msrb.mxu3 %v3420_v3  ;;  %v4527_v3 = vld [vmem:[#allocation5 + $0x4] sm:$0xf0]  ;;  %v3576_v5 = vor.u32 %v4545_v0, %v3575_v63  ;;  %v4528_v0 = vld [vmem:[#allocation5 + $0x14] sm:$0xf] }
  0x91   :  { %1059 = vmatpush.bf16.msrb.mxu0 %v3020_v9  ;;  %v4556_v9 = vld [vmem:[#allocation5 + $0xf4] sm:$0xf] }
  0x92   :  { %1072 = vmatpush.bf16.msrb.mxu1 %v3148_v11  ;;  %v3504_v11 = vor.u32 %v4527_v3, %v3503_v2  ;;  %v3628_v19 = vor.u32 %v4556_v9, %v3625_v10  ;;  %v3577_v9 = vld [vmem:[#allocation5 + $0x98] sm:$0xf0] }
  0x93   :  { %1085 = vmatpush.bf16.msrb.mxu2 %v3276_v12  ;;  %v3687_v12 = vld [vmem:[#allocation5 + $0x170] sm:$0xf] }
  0x94   :  { %1098 = vmatpush.bf16.msrb.mxu3 %v3404_v16  ;;  %v3688_v16 = vor.u32 %v4573_v13, %v3687_v12  ;;  %v3505_v12 = vld [vmem:[#allocation5 + $0x8] sm:$0xf0] }
  0x95   :  { %1060 = vmatpush.bf16.msrb.mxu0 %v3004_v23  ;;  %v4536_v23 = vld [vmem:[#allocation5 + $0x54] sm:$0xf] }
  0x96   :  { %1073 = vmatpush.bf16.msrb.mxu1 %v3132_v26  ;;  %v4552_v26 = vld [vmem:[#allocation5 + $0xd4] sm:$0xf] }
  0x97   :  { %1086 = vmatpush.bf16.msrb.mxu2 %v3260_v27  ;;  %v3609_v27 = vld [vmem:[#allocation5 + $0xd8] sm:$0xf0] }
  0x98   :  { %1099 = vmatpush.bf16.msrb.mxu3 %v3388_v28  ;;  %1061 = vmatmul.bf16.vlgmr.msrb.gmra.mxu0 %v4975_v58  ;;  %v4551_v58 = vld [vmem:[#allocation5 + $0xc4] sm:$0xf0]  ;;  %v5000_v28 = vld [vmem:[%s5215_s3] sm:$0xf] }
  0x99   :  { %1503 = vmatpush.bf16.msra.mxu0 %v3560_v29  ;;  %1074 = vmatmul.bf16.vlgmr.msrb.gmra.mxu1 %v4979_v61  ;;  %v3600_v61 = vor.u32 %v4551_v58, %v3599_v45  ;;  %v3548_v29 = vor.u32 %v4536_v23, %v3545_v24  ;;  %v249_v33 = vperm.slane %v5000_v28, 0  ;;  %v4548_v45 = vld [vmem:[#allocation5 + $0xb4] sm:$0xf]  ;;  %v3656_v24 = vor.u32 %v4565_v20, %v3655_v17 }
  0x9a   :  { %1516 = vmatpush.bf16.msra.mxu1 %v3624_v32  ;;  %1087 = vmatmul.bf16.vlgmr.msrb.gmra.mxu2 %v4973_v55  ;;  %v4549_v55 = vld [vmem:[#allocation5 + $0xb4] sm:$0xf0]  ;;  %v3612_v32 = vor.u32 %v4552_v26, %v3609_v27  ;;  %v3569_v26 = vld [vmem:[#allocation5 + $0x88] sm:$0xf0]  ;;  %v4568_v17 = vld [vmem:[#allocation5 + $0x154] sm:$0xf] }
  0x9b   :  { %1100 = vmatmul.bf16.vlgmr.msrb.gmra.mxu3 %v4977_v59  ;;  %v4531_v59 = vld [vmem:[#allocation5 + $0x24] sm:$0xf0]  ;;  %v3592_v52 = vor.u32 %v4549_v55, %v3591_v49  ;;  %1529 = vmatpush.bf16.msra.mxu2 %v3688_v16  ;;  %v3521_v49 = vld [vmem:[#allocation5 + $0x28] sm:$0xf0]  ;;  %v4589_v16 = vld [vmem:[#allocation5 + $0x1f4] sm:$0xf0] }
  0x9c   :  { %v3520_v56 = vor.u32 %v4531_v59, %v3519_v51  ;;  %v3671_v51 = vld [vmem:[#allocation5 + $0x150] sm:$0xf]  ;;  %v4569_v59 = vld [vmem:[#allocation5 + $0x154] sm:$0xf0] }
  0x9d   :  { %1504 = vmatpush.bf16.msra.mxu0 %v3552_v35  ;;  %v3601_v35 = vld [vmem:[#allocation5 + $0xc8] sm:$0xf0]  ;;  %v3672_v54 = vor.u32 %v4569_v59, %v3671_v51  ;;  %v3689_v51 = vld [vmem:[#allocation5 + $0x178] sm:$0xf0] }
  0x9e   :  { %1517 = vmatpush.bf16.msra.mxu1 %v3616_v38  ;;  %v4532_v38 = vld [vmem:[#allocation5 + $0x34] sm:$0xf]  ;;  %v3604_v40 = vor.u32 %v4550_v34, %v3601_v35  ;;  %v3647_v34 = vld [vmem:[#allocation5 + $0x120] sm:$0xf]  ;;  %v4563_v35 = vld [vmem:[#allocation5 + $0x124] sm:$0xf0] }
  0x9f   :  { %v3532_v48 = vor.u32 %v4532_v38, %v3529_v39  ;;  %v4616_v38 = vld [vmem:[#allocation7 + $0xcc] sm:$0xf0] }
  0xa0   :  { %v3735_v39 = vld [vmem:[#allocation5 + $0x1d0] sm:$0xf] }
  0xa1   :  { %1505 = vmatpush.bf16.msra.mxu0 %v3544_v41 }
  0xa2   :  { %1518 = vmatpush.bf16.msra.mxu1 %v3608_v44  ;;  %v4571_v44 = vld [vmem:[#allocation5 + $0x164] sm:$0xf0] }
  0xa3   :  { %v3680_v58 = vor.u32 %v4571_v44, %v3679_v43  ;;  %v4561_v43 = vld [vmem:[#allocation5 + $0x114] sm:$0xf0] }
  0xa5   :  { %1506 = vmatpush.bf16.msra.mxu0 %v3536_v46  ;;  %v3593_v46 = vld [vmem:[#allocation5 + $0xb8] sm:$0xf0]  ;;  %1530 = vmatpush.bf16.msra.mxu2 %v3680_v58 }
  0xa6   :  { %1519 = vmatpush.bf16.msra.mxu1 %v3600_v61  ;;  %v4530_v61 = vld [vmem:[#allocation5 + $0x24] sm:$0xf]  ;;  %v3596_v55 = vor.u32 %v4548_v45, %v3593_v46  ;;  %v3839_v45 = vld [vmem:[#allocation7 + $0xa0] sm:$0xf]  ;;  %v4612_v46 = vld [vmem:[#allocation7 + $0xac] sm:$0xf0] }
  0xa7   :  { %v3524_v60 = vor.u32 %v4530_v61, %v3521_v49  ;;  %v3631_v61 = vld [vmem:[#allocation5 + $0x100] sm:$0xf]  ;;  %v4559_v49 = vld [vmem:[#allocation5 + $0x104] sm:$0xf0]  ;;  %v3840_v59 = vor.u32 %v4612_v46, %v3839_v45  ;;  %v4588_v45 = vld [vmem:[#allocation5 + $0x1f4] sm:$0xf] }
  0xa8   :  { %v3759_v46 = vld [vmem:[#allocation7] sm:$0xf] }
  0xa9   :  { %1507 = vmatpush.bf16.msra.mxu0 %v3528_v50  ;;  %1531 = vmatpush.bf16.msra.mxu2 %v3672_v54  ;;  %v4608_v54 = vld [vmem:[#allocation7 + $0x8c] sm:$0xf0] }
  0xaa   :  { %1520 = vmatpush.bf16.msra.mxu1 %v3592_v52 }
  0xad   :  { %1508 = vmatpush.bf16.msra.mxu0 %v3520_v56  ;;  %v4546_v56 = vld [vmem:[#allocation5 + $0xa4] sm:$0xf] }
  0xae   :  { %1521 = vmatpush.bf16.msra.mxu1 %v3584_v62  ;;  %v3588_v2 = vor.u32 %v4546_v56, %v3585_v57  ;;  %v250_v57 = vperm.slane %v5000_v28, 1 }
  0xb1   :  { %1509 = vmatpush.bf16.msra.mxu0 %v3512_v1  ;;  %v3513_v1 = vld [vmem:[#allocation5 + $0x18] sm:$0xf0] }
  0xb2   :  { %1522 = vmatpush.bf16.msra.mxu1 %v3576_v5  ;;  %v4567_v5 = vld [vmem:[#allocation5 + $0x144] sm:$0xf0]  ;;  %v3516_v10 = vor.u32 %v4528_v0, %v3513_v1  ;;  %v3807_v1 = vld [vmem:[#allocation7 + $0x60] sm:$0xf] }
  0xb3   :  { %v3664_v7 = vor.u32 %v4567_v5, %v3663_v4  ;;  %v4570_v4 = vld [vmem:[#allocation5 + $0x164] sm:$0xf]  ;;  %v3681_v5 = vld [vmem:[#allocation5 + $0x168] sm:$0xf0] }
  0xb5   :  { %1510 = vmatpush.bf16.msra.mxu0 %v3504_v11  ;;  %v4526_v11 = vld [vmem:[#allocation5 + $0x4] sm:$0xf]  ;;  %1532 = vmatpush.bf16.msra.mxu2 %v3664_v7 }
  0xb6   :  { %1523 = vmatpush.bf16.msra.mxu1 %v3568_v15  ;;  %v919_v42 = vpop.f32.mrf.mxu1  ;;  %v3751_v15 = vld [vmem:[#allocation5 + $0x1f0] sm:$0xf]  ;;  %v3508_v27 = vor.u32 %v4526_v11, %v3505_v12  ;;  %v4579_v11 = vld [vmem:[#allocation5 + $0x1a4] sm:$0xf0] }
  0xb8   :  { %v906_v37 = vpop.f32.mrf.mxu0 }
  0xb9   :  { %1555 = vmatpush.bf16.msrb.mxu0 %v3564_v14  ;;  %v907_v41 = vadd.f32 %v906_v37, %v249_v33  ;;  %v3580_v14 = vor.u32 %v4544_v8, %v3577_v9  ;;  %1533 = vmatpush.bf16.msra.mxu2 %v3656_v24  ;;  %v3855_v37 = vld [vmem:[#allocation7 + $0xc0] sm:$0xf]  ;;  %v3684_v8 = vor.u32 %v4570_v4, %v3681_v5  ;;  %v4577_v24 = vld [vmem:[#allocation5 + $0x194] sm:$0xf0]  ;;  %v3737_v4 = vld [vmem:[#allocation5 + $0x1d8] sm:$0xf0] }
  0xba   :  { %1568 = vmatpush.bf16.msrb.mxu1 %v3628_v19  ;;  %v3752_v19 = vor.u32 %v4589_v16, %v3751_v15  ;;  %v3856_v44 = vor.u32 %v4616_v38, %v3855_v37  ;;  %v3791_v15 = vld [vmem:[#allocation7 + $0x40] sm:$0xf]  ;;  %v4600_v16 = vld [vmem:[#allocation7 + $0x4c] sm:$0xf0] }
  0xbb   :  { %v920_v47 = vadd.f32 %v919_v42, %v907_v41  ;;  %v3639_v41 = vld [vmem:[#allocation5 + $0x110] sm:$0xf]  ;;  %v3983_v38 = vld [vmem:[#allocation7 + $0x1c0] sm:$0xf] }
  0xbc   :  { %1542 = vmatpush.bf16.msra.mxu3 %v3752_v19  ;;  %v3640_v58 = vor.u32 %v4561_v43, %v3639_v41  ;;  %v3695_v41 = vld [vmem:[#allocation5 + $0x180] sm:$0xf] }
  0xbd   :  { %1556 = vmatpush.bf16.msrb.mxu0 %v3556_v22  ;;  %v932_v50 = vpop.f32.mrf.mxu2  ;;  %v4620_v22 = vld [vmem:[#allocation7 + $0xec] sm:$0xf0] }
  0xbe   :  { %1569 = vmatpush.bf16.msrb.mxu1 %v3620_v25  ;;  %v933_v52 = vadd.f32 %v932_v50, %v920_v47  ;;  %v921_v3 = vpop.f32.mrf.mxu1  ;;  %v4542_v25 = vld [vmem:[#allocation5 + $0x84] sm:$0xf]  ;;  %v3872_v31 = vor.u32 %v4620_v22, %v3871_v21  ;;  %v3727_v47 = vld [vmem:[#allocation5 + $0x1c0] sm:$0xf]  ;;  %v4572_v50 = vld [vmem:[#allocation5 + $0x174] sm:$0xf]  ;;  %v3792_v22 = vor.u32 %v4600_v16, %v3791_v15 }
  0xbf   :  { %v3692_v56 = vor.u32 %v4572_v50, %v3689_v51  ;;  %v3729_v15 = vld [vmem:[#allocation5 + $0x1c8] sm:$0xf0]  ;;  %v4558_v16 = vld [vmem:[#allocation5 + $0x104] sm:$0xf] }
  0xc0   :  { %v945_v53 = vpop.f32.mrf.mxu3  ;;  %v908_v63 = vpop.f32.mrf.mxu0 }
  0xc1   :  { %1557 = vmatpush.bf16.msrb.mxu0 %v3548_v29  ;;  %v946_v62 = vadd.f32 %v945_v53, %v933_v52  ;;  %v3743_v29 = vld [vmem:[#allocation5 + $0x1e0] sm:$0xf]  ;;  %v3632_v52 = vor.u32 %v4559_v49, %v3631_v61  ;;  %v4581_v63 = vld [vmem:[#allocation5 + $0x1b4] sm:$0xf0]  ;;  %v4592_v61 = vld [vmem:[#allocation7 + $0xc] sm:$0xf0] }
  0xc2   :  { %1570 = vmatpush.bf16.msrb.mxu1 %v3612_v32  ;;  %v3572_v32 = vor.u32 %v4542_v25, %v3569_v26  ;;  %v3744_v33 = vor.u32 %v4587_v30, %v3743_v29  ;;  %v3823_v53 = vld [vmem:[#allocation7 + $0x80] sm:$0xf]  ;;  %v4596_v29 = vld [vmem:[#allocation7 + $0x2c] sm:$0xf0]  ;;  %v4564_v49 = vld [vmem:[#allocation5 + $0x134] sm:$0xf] }
  0xc3   :  { %v1105_v6 = vmax.f32 %v946_v62, 0.0  ;;  %v3719_v62 = vld [vmem:[#allocation5 + $0x1b0] sm:$0xf]  ;;  %v3999_v25 = vld [vmem:[#allocation7 + $0x1e0] sm:$0xf] }
  0xc4   :  { %1543 = vmatpush.bf16.msra.mxu3 %v3744_v33  ;;  %v3720_v0 = vor.u32 %v4581_v63, %v3719_v62  ;;  %v4566_v33 = vld [vmem:[#allocation5 + $0x144] sm:$0xf]  ;;  %v3967_v62 = vld [vmem:[#allocation7 + $0x1a0] sm:$0xf] }
  0xc5   :  { %1558 = vmatpush.bf16.msrb.mxu0 %v3540_v36  ;;  %v5003_v13 = vpack.c.bf16 %v1105_v6, %v1105_v6  ;;  %v934_v18 = vpop.f32.mrf.mxu2  ;;  %v3648_v36 = vor.u32 %v4563_v35, %v3647_v34  ;;  %v3665_v34 = vld [vmem:[#allocation5 + $0x148] sm:$0xf0] }
  0xc6   :  { %1571 = vmatpush.bf16.msrb.mxu1 %v3604_v40  ;;  %v4585_v40 = vld [vmem:[#allocation5 + $0x1d4] sm:$0xf0]  ;;  %v3673_v18 = vld [vmem:[#allocation5 + $0x158] sm:$0xf0] }
  0xc7   :  { %1511 = vmatmul.bf16.vlgmr.msra.gmra.mxu0 %v5003_v13  ;;  %v3736_v42 = vor.u32 %v4585_v40, %v3735_v39  ;;  %1534 = vmatpush.bf16.msra.mxu2 %v3648_v36  ;;  %v3668_v36 = vor.u32 %v4566_v33, %v3665_v34  ;;  %v4648_v39 = vld [vmem:[#allocation7 + $0x1cc] sm:$0xf0] }
  0xc8   :  { %v947_v23 = vpop.f32.mrf.mxu3 }
  0xc9   :  { %1559 = vmatpush.bf16.msrb.mxu0 %v3532_v48  ;;  %v4583_v48 = vld [vmem:[#allocation5 + $0x1c4] sm:$0xf0]  ;;  %1544 = vmatpush.bf16.msra.mxu3 %v3736_v42  ;;  %v3703_v23 = vld [vmem:[#allocation5 + $0x190] sm:$0xf] }
  0xca   :  { %1572 = vmatpush.bf16.msrb.mxu1 %v3596_v55  ;;  %v3728_v55 = vor.u32 %v4583_v48, %v3727_v47  ;;  %v3704_v26 = vor.u32 %v4577_v24, %v3703_v23  ;;  %v4575_v42 = vld [vmem:[#allocation5 + $0x184] sm:$0xf0]  ;;  %v251_v24 = vperm.slane %v5000_v28, 2 }
  0xcb   :  { %1535 = vmatpush.bf16.msra.mxu2 %v3640_v58  ;;  %v3753_v58 = vld [vmem:[#allocation5 + $0x1f8] sm:$0xf0] }
  0xcc   :  { %v3756_v48 = vor.u32 %v4588_v45, %v3753_v58  ;;  %v4576_v58 = vld [vmem:[#allocation5 + $0x194] sm:$0xf] }
  0xcd   :  { %1560 = vmatpush.bf16.msrb.mxu0 %v3524_v60  ;;  %1545 = vmatpush.bf16.msra.mxu3 %v3728_v55  ;;  %v3824_v60 = vor.u32 %v4608_v54, %v3823_v53  ;;  %v3657_v55 = vld [vmem:[#allocation5 + $0x138] sm:$0xf0]  ;;  %v3760_v53 = vor.u32 %v4592_v61, %v3759_v46  ;;  %v4586_v54 = vld [vmem:[#allocation5 + $0x1e4] sm:$0xf]  ;;  %v3887_v61 = vld [vmem:[#allocation7 + $0x100] sm:$0xf] }
  0xce   :  { %1573 = vmatpush.bf16.msrb.mxu1 %v3588_v2  ;;  %v4604_v2 = vld [vmem:[#allocation7 + $0x6c] sm:$0xf0]  ;;  %v3660_v51 = vor.u32 %v4564_v49, %v3657_v55  ;;  %v3705_v46 = vld [vmem:[#allocation5 + $0x198] sm:$0xf0] }
  0xcf   :  { %1536 = vmatpush.bf16.msra.mxu2 %v3632_v52  ;;  %v3808_v9 = vor.u32 %v4604_v2, %v3807_v1  ;;  %v4644_v1 = vld [vmem:[#allocation7 + $0x1ac] sm:$0xf0]  ;;  %v3708_v55 = vor.u32 %v4576_v58, %v3705_v46  ;;  %v3831_v58 = vld [vmem:[#allocation7 + $0x88] sm:$0xf]  ;;  %v4609_v46 = vld [vmem:[#allocation7 + $0x94] sm:$0xf0] }
  0xd0   :  { %v4624_v49 = vld [vmem:[#allocation7 + $0x10c] sm:$0xf0] }
  0xd1   :  { %1561 = vmatpush.bf16.msrb.mxu0 %v3516_v10  ;;  %1546 = vmatpush.bf16.msra.mxu3 %v3720_v0  ;;  %v3711_v10 = vld [vmem:[#allocation5 + $0x1a0] sm:$0xf]  ;;  %v3649_v0 = vld [vmem:[#allocation5 + $0x128] sm:$0xf0] }
  0xd2   :  { %1574 = vmatpush.bf16.msrb.mxu1 %v3580_v14  ;;  %v3712_v14 = vor.u32 %v4579_v11, %v3711_v10  ;;  %v4640_v11 = vld [vmem:[#allocation7 + $0x18c] sm:$0xf0] }
  0xd3   :  { %1581 = vmatpush.bf16.msrb.mxu2 %v3692_v56  ;;  %v3745_v56 = vld [vmem:[#allocation5 + $0x1e8] sm:$0xf0] }
  0xd4   :  { %v3748_v63 = vor.u32 %v4586_v54, %v3745_v56  ;;  %v3888_v54 = vor.u32 %v4624_v49, %v3887_v61  ;;  %v114_v56 = vld [vmem:[%s5213_s1 + $0x28] sm:$0xff]  ;;  %v3832_v61 = vor.u32 %v4609_v46, %v3831_v58  ;;  %v252_v49 = vperm.slane %v5000_v28, 3  ;;  %v3865_v58 = vld [vmem:[#allocation7 + $0xd8] sm:$0xf0] }
  0xd5   :  { %1562 = vmatpush.bf16.msrb.mxu0 %v3508_v27  ;;  %v958_v3 = vpop.f32.mrf.mxu0  ;;  %1547 = vmatpush.bf16.msra.mxu3 %v3712_v14  ;;  %v3775_v27 = vld [vmem:[#allocation7 + $0x20] sm:$0xf]  ;;  %v4582_v14 = vld [vmem:[#allocation5 + $0x1c4] sm:$0xf]  ;;  %v3943_v28 = vld [vmem:[#allocation7 + $0x168] sm:$0xf] }
  0xd6   :  { %1575 = vmatpush.bf16.msrb.mxu1 %v3572_v32  ;;  %v959_v6 = vadd.f32 %v958_v3, %v250_v57  ;;  %v971_v7 = vpop.f32.mrf.mxu1  ;;  %v3776_v40 = vor.u32 %v4596_v29, %v3775_v27  ;;  %v4562_v57 = vld [vmem:[#allocation5 + $0x124] sm:$0xf]  ;;  %v4584_v3 = vld [vmem:[#allocation5 + $0x1d4] sm:$0xf]  ;;  %v3721_v27 = vld [vmem:[#allocation5 + $0x1b8] sm:$0xf0] }
  0xd7   :  { %1582 = vmatpush.bf16.msrb.mxu2 %v3684_v8  ;;  %v3652_v2 = vor.u32 %v4562_v57, %v3649_v0  ;;  %v3968_v8 = vor.u32 %v4644_v1, %v3967_v62  ;;  %v3740_v10 = vor.u32 %v4584_v3, %v3737_v4  ;;  %v3919_v29 = vld [vmem:[#allocation7 + $0x140] sm:$0xf]  ;;  %v4574_v57 = vld [vmem:[#allocation5 + $0x184] sm:$0xf]  ;;  %v4621_v3 = vld [vmem:[#allocation7 + $0xf4] sm:$0xf0] }
  0xd8   :  { %1563 = vmatmul.bf16.vlgmr.msrb.gmra.mxu0 %v5003_v13  ;;  %v972_v12 = vadd.f32 %v971_v7, %v959_v6  ;;  %v3676_v13 = vor.u32 %v4568_v17, %v3673_v18  ;;  %v4560_v6 = vld [vmem:[#allocation5 + $0x114] sm:$0xf]  ;;  %v3641_v7 = vld [vmem:[#allocation5 + $0x118] sm:$0xf0]  ;;  %v3633_v17 = vld [vmem:[#allocation5 + $0x108] sm:$0xf0] }
  0xd9   :  { %2005 = vmatpush.bf16.msra.mxu0 %v3872_v31  ;;  %v4652_v31 = vld [vmem:[#allocation7 + $0x1ec] sm:$0xf0]  ;;  %1548 = vmatpush.bf16.msra.mxu3 %v3704_v26  ;;  %v4580_v26 = vld [vmem:[#allocation5 + $0x1b4] sm:$0xf]  ;;  %v3895_v46 = vld [vmem:[#allocation7 + $0x108] sm:$0xf] }
  0xda   :  { %v4000_v43 = vor.u32 %v4652_v31, %v3999_v25  ;;  %v3724_v31 = vor.u32 %v4580_v26, %v3721_v27 }
  0xdb   :  { %1583 = vmatpush.bf16.msrb.mxu2 %v3676_v13  ;;  %v2613_v13 = vld [vmem:[#allocation2] sm:$0x1] }
  0xdc   :  { %v4269_v23 = vmul.f32 -1.442695, %v2613_v13  ;;  %v4617_v13 = vld [vmem:[#allocation7 + $0xd4] sm:$0xf0] }
  0xdd   :  { %2006 = vmatpush.bf16.msra.mxu0 %v3856_v44  ;;  %v984_v19 = vpop.f32.mrf.mxu2  ;;  %v960_v32 = vpop.f32.mrf.mxu0  ;;  %v3696_v44 = vor.u32 %v4575_v42, %v3695_v41 }
  0xde   :  { %v985_v20 = vadd.f32 %v984_v19, %v972_v12  ;;  %v997_v21 = vpop.f32.mrf.mxu3  ;;  %v973_v35 = vpop.f32.mrf.mxu1  ;;  %v3644_v12 = vor.u32 %v4560_v6, %v3641_v7  ;;  %v3732_v19 = vor.u32 %v4582_v14, %v3729_v15  ;;  %4761 = vpow2.f32 %v4269_v23  ;;  %v4614_v7 = vld [vmem:[#allocation7 + $0xc4] sm:$0xf]  ;;  %v4653_v14 = vld [vmem:[#allocation7 + $0x1f4] sm:$0xf0] }
  0xdf   :  { %1584 = vmatpush.bf16.msrb.mxu2 %v3668_v36  ;;  %1549 = vmatpush.bf16.msra.mxu3 %v3696_v44  ;;  %v4578_v36 = vld [vmem:[#allocation5 + $0x1a4] sm:$0xf]  ;;  %v5029_v6 = vpack.c.bf16 %v114_v56, %v114_v56  ;;  %v4605_v56 = vld [vmem:[#allocation7 + $0x74] sm:$0xf0] }
  0xe0   :  { %v998_v30 = vadd.f32 %v997_v21, %v985_v20  ;;  %v3935_v20 = vld [vmem:[#allocation7 + $0x160] sm:$0xf]  ;;  %v4636_v21 = vld [vmem:[#allocation7 + $0x16c] sm:$0xf0] }
  0xe1   :  { %2007 = vmatpush.bf16.msra.mxu0 %v3840_v59  ;;  %v113_v59 = vld [vmem:[%s5213_s1 + $0x20] sm:$0xff]  ;;  %v3936_v25 = vor.u32 %v4636_v21, %v3935_v20  ;;  %v3841_v21 = vld [vmem:[#allocation7 + $0xb0] sm:$0xf0] }
  0xe2   :  { %v1106_v37 = vmax.f32 %v998_v30, 0.0  ;;  %v5014_v5 = vpack.c.bf16 %v113_v59, %v113_v59  ;;  %v4632_v30 = vld [vmem:[#allocation7 + $0x14c] sm:$0xf0]  ;;  %v4618_v59 = vld [vmem:[#allocation7 + $0xe4] sm:$0xf] }
  0xe3   :  { %1594 = vmatpush.bf16.msrb.mxu3 %v3756_v48  ;;  %1585 = vmatpush.bf16.msrb.mxu2 %v3660_v51  ;;  %v3920_v35 = vor.u32 %v4632_v30, %v3919_v29  ;;  %v4610_v20 = vld [vmem:[#allocation7 + $0xa4] sm:$0xf]  ;;  %v3847_v30 = vld [vmem:[#allocation7 + $0xa8] sm:$0xf] }
  0xe4   :  { %v5008_v47 = vpack.c.bf16 %v1106_v37, %v1106_v37  ;;  %v3713_v37 = vld [vmem:[#allocation5 + $0x1a8] sm:$0xf0]  ;;  %v3844_v29 = vor.u32 %v4610_v20, %v3841_v21  ;;  %v4597_v20 = vld [vmem:[#allocation7 + $0x34] sm:$0xf0] }
  0xe5   :  { %2008 = vmatpush.bf16.msra.mxu0 %v3824_v60  ;;  %v986_v50 = vpop.f32.mrf.mxu2  ;;  %v3984_v60 = vor.u32 %v4648_v39, %v3983_v38  ;;  %v4762_v38 = vpop.eup %4761  ;;  %v3903_v39 = vld [vmem:[#allocation7 + $0x120] sm:$0xf]  ;;  %v3716_v41 = vor.u32 %v4578_v36, %v3713_v37 }
  0xe6   :  { %1524 = vmatmul.bf16.vlgmr.msra.gmra.mxu1 %v5008_v47  ;;  %v999_v52 = vpop.f32.mrf.mxu3 }
  0xe7   :  { %2018 = vmatpush.bf16.msra.mxu1 %v4000_v43  ;;  %1595 = vmatpush.bf16.msrb.mxu3 %v3748_v63  ;;  %v5019_v43 = vadd.f32 1.0, %v4762_v38  ;;  %v3873_v52 = vld [vmem:[#allocation7 + $0xf0] sm:$0xf0]  ;;  %v3975_v38 = vld [vmem:[#allocation7 + $0x1a8] sm:$0xf] }
  0xe8   :  { %1586 = vmatpush.bf16.msrb.mxu2 %v3652_v2  ;;  %v3876_v1 = vor.u32 %v4618_v59, %v3873_v52  ;;  %v3879_v2 = vld [vmem:[#allocation7 + $0xe8] sm:$0xf] }
  0xe9   :  { %2009 = vmatpush.bf16.msra.mxu0 %v3808_v9  ;;  %v3951_v9 = vld [vmem:[#allocation7 + $0x180] sm:$0xf]  ;;  %4763 = vrcp.f32 %v5019_v43  ;;  %vm2623_vm0 = vweird.f32 %v5019_v43  ;;  %v2629_v37 = vand.u32 2147483648, %v5019_v43 }
  0xea   :  { %v3952_v18 = vor.u32 %v4640_v11, %v3951_v9  ;;  %v3880_v9 = vor.u32 %v4621_v3, %v3879_v2  ;;  %v4637_v2 = vld [vmem:[#allocation7 + $0x174] sm:$0xf0] }
  0xeb   :  { %2019 = vmatpush.bf16.msra.mxu1 %v3984_v60  ;;  %1596 = vmatpush.bf16.msrb.mxu3 %v3740_v10  ;;  %v3697_v60 = vld [vmem:[#allocation5 + $0x188] sm:$0xf0]  ;;  %v3944_v3 = vor.u32 %v4637_v2, %v3943_v28 }
  0xec   :  { %1587 = vmatpush.bf16.msrb.mxu2 %v3644_v12  ;;  %v3700_v63 = vor.u32 %v4574_v57, %v3697_v60  ;;  %v4007_v12 = vld [vmem:[#allocation7 + $0x1e8] sm:$0xf]  ;;  %v4598_v60 = vld [vmem:[#allocation7 + $0x44] sm:$0xf] }
  0xed   :  { %2010 = vmatpush.bf16.msra.mxu0 %v3792_v22  ;;  %v3636_v22 = vor.u32 %v4558_v16, %v3633_v17  ;;  %v4008_v16 = vor.u32 %v4653_v14, %v4007_v12  ;;  %v3777_v12 = vld [vmem:[#allocation7 + $0x30] sm:$0xf0] }
  0xef   :  { %2020 = vmatpush.bf16.msra.mxu1 %v3968_v8  ;;  %1597 = vmatpush.bf16.msrb.mxu3 %v3732_v19  ;;  %v5025_v0 = vpop.eup %4763  ;;  %v3857_v8 = vld [vmem:[#allocation7 + $0xd0] sm:$0xf0]  ;;  %v3863_v19 = vld [vmem:[#allocation7 + $0xc8] sm:$0xf] }
  0xf0   :  { %1588 = vmatpush.bf16.msrb.mxu2 %v3636_v22  ;;  %v2619_v10 = vmul.f32 %v5025_v0, %v5019_v43  ;;  %v3864_v22 = vor.u32 %v4617_v13, %v3863_v19  ;;  %vm2624_vm1 = vweird.f32 %v5025_v0  ;;  %v3783_v13 = vld [vmem:[#allocation7 + $0x28] sm:$0xf] }
  0xf1   :  { %2011 = vmatpush.bf16.msra.mxu0 %v3776_v40  ;;  %v4628_v40 = vld [vmem:[#allocation7 + $0x12c] sm:$0xf0]  ;;  %vm5039_vm2 = vmor %vm2623_vm0, %vm2624_vm1 }
  0xf2   :  { %v3904_v45 = vor.u32 %v4628_v40, %v3903_v39  ;;  %v2620_v17 = vsub.f32 1.0, %v2619_v10  ;;  %v4645_v39 = vld [vmem:[#allocation7 + $0x1b4] sm:$0xf0] }
  0xf3   :  { %2021 = vmatpush.bf16.msra.mxu1 %v3952_v18  ;;  %1598 = vmatpush.bf16.msrb.mxu3 %v3724_v31  ;;  %v3860_v18 = vor.u32 %v4614_v7, %v3857_v8  ;;  %v4613_v31 = vld [vmem:[#allocation7 + $0xb4] sm:$0xf0]  ;;  %v3799_v8 = vld [vmem:[#allocation7 + $0x48] sm:$0xf] }
  0xf4   :  { %v2621_v23 = vmul.f32 %v5025_v0, %v2620_v17  ;;  %v3848_v36 = vor.u32 %v4613_v31, %v3847_v30  ;;  %v4633_v17 = vld [vmem:[#allocation7 + $0x154] sm:$0xf0]  ;;  %v3881_v30 = vld [vmem:[#allocation7 + $0xf8] sm:$0xf0]  ;;  %v3911_v31 = vld [vmem:[#allocation7 + $0x128] sm:$0xf] }
  0xf5   :  { %2012 = vmatpush.bf16.msra.mxu0 %v3760_v53  ;;  %v1010_v32 = vpop.f32.mrf.mxu0 }
  0xf6   :  { %1576 = vmatmul.bf16.vlgmr.msrb.gmra.mxu1 %v5008_v47  ;;  %v1011_v33 = vadd.f32 %v1010_v32, %v251_v24  ;;  %v1023_v34 = vpop.f32.mrf.mxu1  ;;  %v3991_v24 = vld [vmem:[#allocation7 + $0x1c8] sm:$0xf]  ;;  %v2622_v27 = vadd.f32 %v5025_v0, %v2621_v23  ;;  %v4629_v32 = vld [vmem:[#allocation7 + $0x134] sm:$0xf0] }
  0xf7   :  { %2022 = vmatpush.bf16.msra.mxu1 %v3936_v25  ;;  %1599 = vmatpush.bf16.msrb.mxu3 %v3716_v41  ;;  %v4649_v25 = vld [vmem:[#allocation7 + $0x1d4] sm:$0xf0]  ;;  %v3976_v41 = vor.u32 %v4645_v39, %v3975_v38  ;;  %v3767_v38 = vld [vmem:[#allocation7 + $0x8] sm:$0xf] }
  0xf8   :  { %2013 = vmatmul.bf16.vlgmr.msra.gmra.mxu0 %v5014_v5  ;;  %v1024_v42 = vadd.f32 %v1023_v34, %v1011_v33  ;;  %v3992_v26 = vor.u32 %v4649_v25, %v3991_v24  ;;  %v2627_v33 = vand.u32 2147483647, %v5019_v43  ;;  %v4606_v34 = vld [vmem:[#allocation7 + $0x84] sm:$0xf]  ;;  %v2626_v40 = vsel %vm5039_vm2, %v5025_v0, %v2622_v27  ;;  %v3809_v43 = vld [vmem:[#allocation7 + $0x70] sm:$0xf0] }
  0xf9   :  { %2057 = vmatpush.bf16.msrb.mxu0 %v3880_v9  ;;  %v4601_v9 = vld [vmem:[#allocation7 + $0x54] sm:$0xf0]  ;;  %v4590_v24 = vld [vmem:[#allocation7 + $0x4] sm:$0xf]  ;;  %v3761_v25 = vld [vmem:[#allocation7 + $0x10] sm:$0xf0]  ;;  %v3784_v27 = vor.u32 %v4597_v20, %v3783_v13 }
  0xfa   :  { %vm2628_vm3 = vcmp.eq.f32.partialorder %v2627_v33, 8.507059e+37  ;;  %v3800_v14 = vor.u32 %v4601_v9, %v3799_v8  ;;  %v4593_v39 = vld [vmem:[#allocation7 + $0x14] sm:$0xf0]  ;;  %v4634_v8 = vld [vmem:[#allocation7 + $0x164] sm:$0xf] }
  0xfb   :  { %2023 = vmatpush.bf16.msra.mxu1 %v3920_v35  ;;  %1600 = vmatpush.bf16.msrb.mxu3 %v3708_v55  ;;  %v3825_v35 = vld [vmem:[#allocation7 + $0x90] sm:$0xf0]  ;;  %v4071_v13 = vld [vmem:[#allocation8 + $0x70] sm:$0xf]  ;;  %v4669_v20 = vld [vmem:[#allocation8 + $0x74] sm:$0xf0] }
  0xfc   :  { %v3937_v9 = vld [vmem:[#allocation7 + $0x170] sm:$0xf0] }
  0xfd   :  { %v1036_v44 = vpop.f32.mrf.mxu2  ;;  %v1012_v51 = vpop.f32.mrf.mxu0  ;;  %2058 = vmatpush.bf16.msrb.mxu0 %v3864_v22 }
  0xfe   :  { %v1037_v47 = vadd.f32 %v1036_v44, %v1024_v42  ;;  %v1049_v48 = vpop.f32.mrf.mxu3  ;;  %v1025_v53 = vpop.f32.mrf.mxu1  ;;  %v4875_v42 = vmov 0   ;;  %v2630_v44 = vor.u32 1.1754944e-38, %v2629_v37  ;;  %v4641_v51 = vld [vmem:[#allocation7 + $0x194] sm:$0xf0]  ;;  %v3764_v37 = vor.u32 %v4590_v24, %v3761_v25  ;;  %v4591_v25 = vld [vmem:[#allocation7 + $0xc] sm:$0xf] }
  0xff   :  { %2024 = vmatpush.bf16.msra.mxu1 %v3904_v45  ;;  %1601 = vmatpush.bf16.msrb.mxu3 %v3700_v63  ;;  %v3828_v45 = vor.u32 %v4606_v34, %v3825_v35  ;;  %v4650_v34 = vld [vmem:[#allocation7 + $0x1e4] sm:$0xf]  ;;  %v4001_v35 = vld [vmem:[#allocation7 + $0x1f0] sm:$0xf0] }
 0x100   :  { %v1050_v50 = vadd.f32 %v1049_v48, %v1037_v47  ;;  %4759 = vset.pattern.permute.xlu0 %v4875_v42  ;;  %4760 = vset.pattern.permute.xlu1 %v4875_v42  ;;  %v4602_v47 = vld [vmem:[#allocation7 + $0x64] sm:$0xf]  ;;  %v2631_v48 = vsel %vm2628_vm3, %v2630_v44, %v2626_v40  ;;  %v4615_v42 = vld [vmem:[#allocation7 + $0xcc] sm:$0xf]  ;;  %v3768_v44 = vor.u32 %v4593_v39, %v3767_v38  ;;  %v4055_v38 = vld [vmem:[#allocation8 + $0x50] sm:$0xf] }
 0x101   :  { %2059 = vmatpush.bf16.msrb.mxu0 %v3848_v36  ;;  %v2641_v55 = vsub.f32 1.0, %v2631_v48  ;;  %2652 = vperm.xlu1 %4760, %v2631_v48   ;;  %v3812_v52 = vor.u32 %v4602_v47, %v3809_v43  ;;  %v3912_v36 = vor.u32 %v4629_v32, %v3911_v31  ;;  %v4625_v47 = vld [vmem:[#allocation7 + $0x114] sm:$0xf0]  ;;  %v4622_v31 = vld [vmem:[#allocation7 + $0x104] sm:$0xf] }
 0x102   :  { %v1107_v62 = vmax.f32 %v1050_v50, 0.0  ;;  %v3959_v50 = vld [vmem:[#allocation7 + $0x188] sm:$0xf]  ;;  %v3889_v32 = vld [vmem:[#allocation7 + $0x110] sm:$0xf0] }
 0x103   :  { %2025 = vmatpush.bf16.msra.mxu1 %v3888_v54  ;;  %v3960_v59 = vor.u32 %v4641_v51, %v3959_v50  ;;  %v2643_v53 = vperm.slane %v2641_v55, 0  ;;  %v3815_v54 = vld [vmem:[#allocation7 + $0x68] sm:$0xf]  ;;  %v3868_v51 = vor.u32 %v4615_v42, %v3865_v58  ;;  %v4665_v39 = vld [vmem:[#allocation8 + $0x54] sm:$0xf0] }
 0x104   :  { %v5027_v4 = vpack.c.bf16 %v1107_v62, %v1107_v62  ;;  %v3793_v62 = vld [vmem:[#allocation7 + $0x50] sm:$0xf0]  ;;  %v3816_v63 = vor.u32 %v4605_v56, %v3815_v54  ;;  %v4642_v54 = vld [vmem:[#allocation7 + $0x1a4] sm:$0xf]  ;;  %v4647_v42 = vld [vmem:[#allocation7 + $0x1cc] sm:$0xf] }
 0x105   :  { %v1038_v11 = vpop.f32.mrf.mxu2  ;;  %2060 = vmatpush.bf16.msrb.mxu0 %v3832_v61  ;;  %2645 = vperm.xlu0 %4759, %v2643_v53   ;;  %v3796_v7 = vor.u32 %v4598_v60, %v3793_v62  ;;  %v3985_v61 = vld [vmem:[#allocation7 + $0x1d0] sm:$0xf0]  ;;  %v3849_v53 = vld [vmem:[#allocation7 + $0xb8] sm:$0xf0]  ;;  %v4607_v62 = vld [vmem:[#allocation7 + $0x8c] sm:$0xf] }
 0x106   :  { %1537 = vmatmul.bf16.vlgmr.msra.gmra.mxu2 %v5027_v4  ;;  %v1051_v15 = vpop.f32.mrf.mxu3  ;;  %2026 = vmatmul.bf16.vlgmr.msra.gmra.mxu1 %v5029_v6  ;;  %v4594_v11 = vld [vmem:[#allocation7 + $0x24] sm:$0xf]  ;;  %v3969_v56 = vld [vmem:[#allocation7 + $0x1b0] sm:$0xf0]  ;;  %v4663_v58 = vld [vmem:[#allocation8 + $0x44] sm:$0xf0] }
 0x107   :  { %2031 = vmatpush.bf16.msra.mxu2 %v3876_v1  ;;  %2070 = vmatpush.bf16.msrb.mxu1 %v4008_v16  ;;  %v2634_v15 = vperm.slane %v2631_v48, 0  ;;  %v3927_v16 = vld [vmem:[#allocation7 + $0x148] sm:$0xf]  ;;  %v4646_v48 = vld [vmem:[#allocation7 + $0x1c4] sm:$0xf]  ;;  %v3972_v60 = vor.u32 %v4642_v54, %v3969_v56 }
 0x108   :  { %v3961_v54 = vld [vmem:[#allocation7 + $0x198] sm:$0xf0] }
 0x109   :  { %2061 = vmatpush.bf16.msrb.mxu0 %v3816_v63  ;;  %2659 = vperm.xlu1 %4760, %v2641_v55   ;;  %v3833_v63 = vld [vmem:[#allocation7 + $0x98] sm:$0xf0] }
 0x10a   :  { %v3836_v28 = vor.u32 %v4607_v62, %v3833_v63  ;;  %v4023_v62 = vld [vmem:[#allocation8 + $0x10] sm:$0xf]  ;;  %v4657_v63 = vld [vmem:[#allocation8 + $0x14] sm:$0xf0] }
 0x10b   :  { %2032 = vmatpush.bf16.msra.mxu2 %v3860_v18  ;;  %2071 = vmatpush.bf16.msrb.mxu1 %v3992_v26  ;;  %v3928_v18 = vor.u32 %v4633_v17, %v3927_v16  ;;  %v4619_v26 = vld [vmem:[#allocation7 + $0xec] sm:$0xf]  ;;  %v3921_v16 = vld [vmem:[#allocation7 + $0x150] sm:$0xf0] }
 0x10d   :  { %2062 = vmatpush.bf16.msrb.mxu0 %v3800_v14  ;;  %2636 = vperm.xlu0 %4759, %v2634_v15   ;;  %v3801_v14 = vld [vmem:[#allocation7 + $0x58] sm:$0xf0]  ;;  %v4630_v15 = vld [vmem:[#allocation7 + $0x144] sm:$0xf] }
 0x10f   :  { %2033 = vmatpush.bf16.msra.mxu2 %v3844_v29  ;;  %2072 = vmatpush.bf16.msrb.mxu1 %v3976_v41  ;;  %v3884_v41 = vor.u32 %v4619_v26, %v3881_v30  ;;  %v4667_v30 = vld [vmem:[#allocation8 + $0x64] sm:$0xf0] }
 0x111   :  { %2063 = vmatpush.bf16.msrb.mxu0 %v3784_v27  ;;  %v3769_v27 = vld [vmem:[#allocation7 + $0x18] sm:$0xf0] }
 0x113   :  { %2034 = vmatpush.bf16.msra.mxu2 %v3828_v45  ;;  %2073 = vmatpush.bf16.msrb.mxu1 %v3960_v59  ;;  %v4004_v45 = vor.u32 %v4650_v34, %v4001_v35  ;;  %v3988_v59 = vor.u32 %v4646_v48, %v3985_v61  ;;  %v4651_v34 = vld [vmem:[#allocation7 + $0x1ec] sm:$0xf]  ;;  %v4009_v35 = vld [vmem:[#allocation7 + $0x1f8] sm:$0xf0]  ;;  %v4039_v61 = vld [vmem:[#allocation8 + $0x30] sm:$0xf] }
 0x114   :  { %v3977_v48 = vld [vmem:[#allocation7 + $0x1b8] sm:$0xf0] }
 0x115   :  { %v1062_v57 = vpop.f32.mrf.mxu0  ;;  %2064 = vmatpush.bf16.msrb.mxu0 %v3768_v44  ;;  %v3993_v44 = vld [vmem:[#allocation7 + $0x1d8] sm:$0xf0] }
 0x116   :  { %v1063_v0 = vadd.f32 %v1062_v57, %v252_v49  ;;  %v1075_v1 = vpop.f32.mrf.mxu1  ;;  %1589 = vmatmul.bf16.vlgmr.msrb.gmra.mxu2 %v5027_v4  ;;  %v3780_v4 = vor.u32 %v4594_v11, %v3777_v12  ;;  %v3896_v49 = vor.u32 %v4625_v47, %v3895_v46  ;;  %v3940_v11 = vor.u32 %v4634_v8, %v3937_v9  ;;  %v4599_v12 = vld [vmem:[#allocation7 + $0x4c] sm:$0xf] }
 0x117   :  { %2035 = vmatpush.bf16.msra.mxu2 %v3812_v52  ;;  %2074 = vmatpush.bf16.msrb.mxu1 %v3944_v3  ;;  %v4611_v52 = vld [vmem:[#allocation7 + $0xac] sm:$0xf]  ;;  %v3804_v17 = vor.u32 %v4599_v12, %v3801_v14  ;;  %v3996_v46 = vor.u32 %v4647_v42, %v3993_v44  ;;  %v4654_v42 = vld [vmem:[#allocation8 + $0x4] sm:$0xf] }
 0x118   :  { %v1076_v10 = vadd.f32 %v1075_v1, %v1063_v0  ;;  %2065 = vmatmul.bf16.vlgmr.msrb.gmra.mxu0 %v5014_v5  ;;  %v3852_v57 = vor.u32 %v4611_v52, %v3849_v53  ;;  %v4638_v0 = vld [vmem:[#allocation7 + $0x184] sm:$0xf]  ;;  %v3953_v1 = vld [vmem:[#allocation7 + $0x190] sm:$0xf0]  ;;  %v4603_v3 = vld [vmem:[#allocation7 + $0x6c] sm:$0xf] }
 0x119   :  { %v3956_v2 = vor.u32 %v4638_v0, %v3953_v1  ;;  %v4639_v53 = vld [vmem:[#allocation7 + $0x18c] sm:$0xf]  ;;  %v4015_v0 = vld [vmem:[#allocation8] sm:$0xf] }
 0x11a   :  { %v4631_v9 = vld [vmem:[#allocation7 + $0x14c] sm:$0xf] }
 0x11b   :  { %2036 = vmatpush.bf16.msra.mxu2 %v3796_v7  ;;  %2075 = vmatpush.bf16.msrb.mxu1 %v3928_v18  ;;  %v3817_v7 = vld [vmem:[#allocation7 + $0x78] sm:$0xf0]  ;;  %v4595_v18 = vld [vmem:[#allocation7 + $0x2c] sm:$0xf] }
 0x11c   :  { %v4017_v44 = vld [vmem:[#allocation8 + $0x8] sm:$0xf0] }
 0x11d   :  { %v1088_v19 = vpop.f32.mrf.mxu2  ;;  %v1064_v23 = vpop.f32.mrf.mxu0 }
 0x11e   :  { %v1089_v21 = vadd.f32 %v1088_v19, %v1076_v10  ;;  %v1101_v22 = vpop.f32.mrf.mxu3  ;;  %v1077_v29 = vpop.f32.mrf.mxu1  ;;  %v3820_v10 = vor.u32 %v4603_v3, %v3817_v7  ;;  %v3924_v19 = vor.u32 %v4630_v15, %v3921_v16  ;;  %v4072_v23 = vor.u32 %v4669_v20, %v4071_v13  ;;  %v4668_v3 = vld [vmem:[#allocation8 + $0x74] sm:$0xf]  ;;  %v4073_v7 = vld [vmem:[#allocation8 + $0x78] sm:$0xf0]  ;;  %v4627_v15 = vld [vmem:[#allocation7 + $0x12c] sm:$0xf] }
 0x11f   :  { %2037 = vmatpush.bf16.msra.mxu2 %v3780_v4  ;;  %2076 = vmatpush.bf16.msrb.mxu1 %v3912_v36  ;;  %v3785_v4 = vld [vmem:[#allocation7 + $0x38] sm:$0xf0]  ;;  %v4063_v29 = vld [vmem:[#allocation8 + $0x60] sm:$0xf]  ;;  %v3772_v36 = vor.u32 %v4591_v25, %v3769_v27  ;;  %v4076_v12 = vor.u32 %v4668_v3, %v4073_v7  ;;  %v4623_v20 = vld [vmem:[#allocation7 + $0x10c] sm:$0xf] }
 0x120   :  { %v1102_v33 = vadd.f32 %v1101_v22, %v1089_v21  ;;  %v4626_v21 = vld [vmem:[#allocation7 + $0x124] sm:$0xf]  ;;  %v3905_v22 = vld [vmem:[#allocation7 + $0x130] sm:$0xf0]  ;;  %v3788_v24 = vor.u32 %v4595_v18, %v3785_v4  ;;  %2507 = vmatpush.bf16.msra.mxu0 %v4072_v23  ;;  %v3913_v16 = vld [vmem:[#allocation7 + $0x138] sm:$0xf0] }
 0x121   :  { %v3908_v26 = vor.u32 %v4626_v21, %v3905_v22  ;;  %v4666_v18 = vld [vmem:[#allocation8 + $0x64] sm:$0xf]  ;;  %v4664_v4 = vld [vmem:[#allocation8 + $0x54] sm:$0xf]  ;;  %v3897_v21 = vld [vmem:[#allocation7 + $0x118] sm:$0xf0] }
 0x122   :  { %v1108_v40 = vmax.f32 %v1102_v33, 0.0  ;;  %v4064_v33 = vor.u32 %v4667_v30, %v4063_v29  ;;  %v4057_v23 = vld [vmem:[#allocation8 + $0x58] sm:$0xf0]  ;;  %v3900_v25 = vor.u32 %v4623_v20, %v3897_v21  ;;  %v4049_v27 = vld [vmem:[#allocation8 + $0x48] sm:$0xf0] }
 0x123   :  { %2038 = vmatpush.bf16.msra.mxu2 %v3764_v37  ;;  %2077 = vmatpush.bf16.msrb.mxu1 %v3896_v49  ;;  %v3892_v37 = vor.u32 %v4622_v31, %v3889_v32  ;;  %v4661_v49 = vld [vmem:[#allocation8 + $0x34] sm:$0xf0]  ;;  %v4660_v30 = vld [vmem:[#allocation8 + $0x34] sm:$0xf]  ;;  %v4041_v31 = vld [vmem:[#allocation8 + $0x38] sm:$0xf0] }
 0x124   :  { %v1112_v43 = vpack.c.bf16 %v1108_v40, %v1108_v40  ;;  %2508 = vmatpush.bf16.msra.mxu0 %v4064_v33  ;;  %v4012_v40 = vor.u32 %v4651_v34, %v4009_v35  ;;  %v4044_v33 = vor.u32 %v4660_v30, %v4041_v31  ;;  %v4658_v34 = vld [vmem:[#allocation8 + $0x24] sm:$0xf]  ;;  %v4033_v35 = vld [vmem:[#allocation8 + $0x28] sm:$0xf0]  ;;  %v4191_v7 = vld [vmem:[#allocation8 + $0x160] sm:$0xf] }
 0x125   :  { %v1090_v55 = vpop.f32.mrf.mxu2  ;;  %v4673_v30 = vld [vmem:[#allocation8 + $0x94] sm:$0xf0] }
 0x126   :  { %v1103_v50 = vpop.f32.mrf.mxu3  ;;  %1550 = vmatmul.bf16.vlgmr.msra.gmra.mxu3 %v1112_v43  ;;  %2039 = vmatmul.bf16.vlgmr.msra.gmra.mxu2 %v5014_v5 }
 0x127   :  { %2083 = vmatpush.bf16.msrb.mxu2 %v3884_v41  ;;  %2044 = vmatpush.bf16.msra.mxu3 %v4004_v45  ;;  %v4056_v41 = vor.u32 %v4665_v39, %v4055_v38  ;;  %v4047_v45 = vld [vmem:[#allocation8 + $0x40] sm:$0xf]  ;;  %v4040_v50 = vor.u32 %v4661_v49, %v4039_v61  ;;  %v4656_v38 = vld [vmem:[#allocation8 + $0x14] sm:$0xf]  ;;  %v4025_v39 = vld [vmem:[#allocation8 + $0x18] sm:$0xf0] }
 0x128   :  { %2078 = vmatmul.bf16.vlgmr.msrb.gmra.mxu1 %v5029_v6  ;;  %v4048_v47 = vor.u32 %v4663_v58, %v4047_v45  ;;  %v5063_v45 = vld [vmem:[%s5217_s5] sm:$0x3]  ;;  %v4020_v58 = vor.u32 %v4654_v42, %v4017_v44  ;;  %v4683_v49 = vld [vmem:[#allocation8 + $0xe4] sm:$0xf0] }
 0x129   :  { %2509 = vmatpush.bf16.msra.mxu0 %v4056_v41  ;;  %v4127_v61 = vld [vmem:[#allocation8 + $0xe0] sm:$0xf]  ;;  %v4691_v44 = vld [vmem:[#allocation8 + $0x124] sm:$0xf0] }
 0x12a   :  { %v4159_v42 = vld [vmem:[#allocation8 + $0x120] sm:$0xf] }
 0x12b   :  { %2084 = vmatpush.bf16.msrb.mxu2 %v3868_v51  ;;  %2045 = vmatpush.bf16.msra.mxu3 %v3988_v59  ;;  %v4031_v51 = vld [vmem:[#allocation8 + $0x20] sm:$0xf]  ;;  %v4659_v59 = vld [vmem:[#allocation8 + $0x24] sm:$0xf0] }
 0x12c   :  { %v4032_v56 = vor.u32 %v4659_v59, %v4031_v51 }
 0x12d   :  { %2510 = vmatpush.bf16.msra.mxu0 %v4048_v47  ;;  %v4135_v47 = vld [vmem:[#allocation8 + $0xf0] sm:$0xf] }
 0x12f   :  { %2085 = vmatpush.bf16.msrb.mxu2 %v3852_v57  ;;  %2046 = vmatpush.bf16.msra.mxu3 %v3972_v60  ;;  %v3964_v57 = vor.u32 %v4639_v53, %v3961_v54  ;;  %v4635_v60 = vld [vmem:[#allocation7 + $0x16c] sm:$0xf]  ;;  %v4119_v54 = vld [vmem:[#allocation8 + $0xd0] sm:$0xf] }
 0x131   :  { %2511 = vmatpush.bf16.msra.mxu0 %v4040_v50  ;;  %v4128_v50 = vor.u32 %v4683_v49, %v4127_v61  ;;  %v4682_v49 = vld [vmem:[#allocation8 + $0xe4] sm:$0xf] }
 0x133   :  { %2086 = vmatpush.bf16.msrb.mxu2 %v3836_v28  ;;  %2047 = vmatpush.bf16.msra.mxu3 %v3956_v2  ;;  %v4024_v28 = vor.u32 %v4657_v63, %v4023_v62  ;;  %v4655_v2 = vld [vmem:[#allocation8 + $0x4] sm:$0xf0]  ;;  %v4701_v62 = vld [vmem:[#allocation8 + $0x174] sm:$0xf0] }
 0x135   :  { %2512 = vmatpush.bf16.msra.mxu0 %v4032_v56  ;;  %v4681_v56 = vld [vmem:[#allocation8 + $0xd4] sm:$0xf0] }
 0x136   :  { %1602 = vmatmul.bf16.vlgmr.msrb.gmra.mxu3 %v1112_v43  ;;  %v4643_v43 = vld [vmem:[#allocation7 + $0x1ac] sm:$0xf] }
 0x137   :  { %2087 = vmatpush.bf16.msrb.mxu2 %v3820_v10  ;;  %2048 = vmatpush.bf16.msra.mxu3 %v3940_v11  ;;  %v3980_v55 = vor.u32 %v4643_v43, %v3977_v48  ;;  %v3929_v10 = vld [vmem:[#allocation7 + $0x158] sm:$0xf0]  ;;  %v4016_v11 = vor.u32 %v4655_v2, %v4015_v0  ;;  %v4685_v43 = vld [vmem:[#allocation8 + $0xf4] sm:$0xf0]  ;;  %v4111_v0 = vld [vmem:[#allocation8 + $0xc0] sm:$0xf] }
 0x138   :  { %v3932_v14 = vor.u32 %v4631_v9, %v3929_v10  ;;  %v4136_v48 = vor.u32 %v4685_v43, %v4135_v47  ;;  %v4103_v10 = vld [vmem:[#allocation8 + $0xb0] sm:$0xf]  ;;  %v4137_v47 = vld [vmem:[#allocation8 + $0xf8] sm:$0xf0] }
 0x139   :  { %2513 = vmatpush.bf16.msra.mxu0 %v4024_v28  ;;  %v4151_v43 = vld [vmem:[#allocation8 + $0x110] sm:$0xf] }
 0x13a   :  { %2520 = vmatpush.bf16.msra.mxu1 %v4136_v48  ;;  %v4689_v48 = vld [vmem:[#allocation8 + $0x114] sm:$0xf0] }
 0x13b   :  { %2088 = vmatpush.bf16.msrb.mxu2 %v3804_v17  ;;  %2049 = vmatpush.bf16.msra.mxu3 %v3924_v19  ;;  %v3916_v17 = vor.u32 %v4627_v15, %v3913_v16  ;;  %v4065_v19 = vld [vmem:[#allocation8 + $0x68] sm:$0xf0]  ;;  %v4183_v15 = vld [vmem:[#allocation8 + $0x150] sm:$0xf]  ;;  %v4697_v16 = vld [vmem:[#allocation8 + $0x154] sm:$0xf0] }
 0x13c   :  { %v4068_v22 = vor.u32 %v4666_v18, %v4065_v19 }
 0x13d   :  { %2514 = vmatpush.bf16.msra.mxu0 %v4016_v11  ;;  %v4677_v11 = vld [vmem:[#allocation8 + $0xb4] sm:$0xf0] }
 0x13e   :  { %2521 = vmatpush.bf16.msra.mxu1 %v4128_v50  ;;  %v4152_v50 = vor.u32 %v4689_v48, %v4151_v43 }
 0x13f   :  { %2089 = vmatpush.bf16.msrb.mxu2 %v3788_v24  ;;  %2050 = vmatpush.bf16.msra.mxu3 %v3908_v26  ;;  %v4060_v24 = vor.u32 %v4664_v4, %v4057_v23  ;;  %v4662_v26 = vld [vmem:[#allocation8 + $0x44] sm:$0xf]  ;;  %v4095_v4 = vld [vmem:[#allocation8 + $0xa0] sm:$0xf]  ;;  %v4695_v23 = vld [vmem:[#allocation8 + $0x144] sm:$0xf0] }
 0x140   :  { %v4052_v29 = vor.u32 %v4662_v26, %v4049_v27 }
 0x141   :  { %2559 = vmatpush.bf16.msrb.mxu0 %v4076_v12 }
 0x143   :  { %2090 = vmatpush.bf16.msrb.mxu2 %v3772_v36  ;;  %2051 = vmatpush.bf16.msra.mxu3 %v3892_v37  ;;  %v4036_v37 = vor.u32 %v4658_v34, %v4033_v35  ;;  %v4724_v34 = vld [vmem:[%s5222_s10 + $0x30] sm:$0xff] }
 0x144   :  { %v5055_v52 = vpop.f32.mrf.mxu0 }
 0x145   :  { %2560 = vmatpush.bf16.msrb.mxu0 %v4068_v22  ;;  %v4175_v22 = vld [vmem:[#allocation8 + $0x140] sm:$0xf] }
 0x146   :  { %2091 = vmatmul.bf16.vlgmr.msrb.gmra.mxu2 %v5014_v5  ;;  %2052 = vmatmul.bf16.vlgmr.msra.gmra.mxu3 %v5029_v6  ;;  %v3945_v5 = vld [vmem:[#allocation7 + $0x178] sm:$0xf0]  ;;  %v4176_v26 = vor.u32 %v4695_v23, %v4175_v22  ;;  %v4676_v23 = vld [vmem:[#allocation8 + $0xb4] sm:$0xf] }
 0x147   :  { %2096 = vmatpush.bf16.msrb.mxu3 %v4012_v40  ;;  %v3948_v1 = vor.u32 %v4635_v60, %v3945_v5  ;;  %v4028_v40 = vor.u32 %v4656_v38, %v4025_v39  ;;  %v4120_v60 = vor.u32 %v4681_v56, %v4119_v54  ;;  %v4199_v5 = vld [vmem:[#allocation8 + $0x170] sm:$0xf]  ;;  %v4723_v38 = vld [vmem:[%s5222_s10 + $0x28] sm:$0xff]  ;;  %v4079_v39 = vld [vmem:[#allocation8 + $0x80] sm:$0xf] }
 0x148   :  { %v4200_v63 = vor.u32 %v4701_v62, %v4199_v5  ;;  %v4721_v54 = vld [vmem:[%s5222_s10 + $0x18] sm:$0xff]  ;;  %v4143_v56 = vld [vmem:[#allocation8 + $0x100] sm:$0xf] }
 0x149   :  { %2561 = vmatpush.bf16.msrb.mxu0 %v4060_v24  ;;  %2522 = vmatpush.bf16.msra.mxu1 %v4120_v60  ;;  %v4687_v60 = vld [vmem:[#allocation8 + $0x104] sm:$0xf0]  ;;  %v4680_v5 = vld [vmem:[#allocation8 + $0xd4] sm:$0xf] }
 0x14a   :  { %2533 = vmatpush.bf16.msra.mxu2 %v4200_v63  ;;  %v4144_v63 = vor.u32 %v4687_v60, %v4143_v56  ;;  %v4692_v56 = vld [vmem:[#allocation8 + $0x134] sm:$0xf] }
 0x14b   :  { %2097 = vmatpush.bf16.msrb.mxu3 %v3996_v46  ;;  %v1180_v46 = vperm.slane %v5063_v45, 1 }
 0x14c   :  { %v1514_v8 = vpop.f32.mrf.mxu0 }
 0x14d   :  { %2562 = vmatpush.bf16.msrb.mxu0 %v4052_v29  ;;  %v4699_v8 = vld [vmem:[#allocation8 + $0x164] sm:$0xf0]  ;;  %v4087_v29 = vld [vmem:[#allocation8 + $0x90] sm:$0xf] }
 0x14e   :  { %v4192_v9 = vor.u32 %v4699_v8, %v4191_v7  ;;  %v4088_v31 = vor.u32 %v4673_v30, %v4087_v29  ;;  %v1179_v8 = vperm.slane %v5063_v45, 0  ;;  %v4719_v45 = vld [vmem:[%s5222_s10 + $0x8] sm:$0xff]  ;;  %v4185_v30 = vld [vmem:[#allocation8 + $0x158] sm:$0xf0] }
 0x14f   :  { %2098 = vmatpush.bf16.msrb.mxu3 %v3980_v55 }
 0x150   :  { %2534 = vmatpush.bf16.msra.mxu2 %v4192_v9  ;;  %v4720_v9 = vld [vmem:[%s5222_s10 + $0x10] sm:$0xff] }
 0x151   :  { %2563 = vmatpush.bf16.msrb.mxu0 %v4044_v33  ;;  %v4693_v33 = vld [vmem:[#allocation8 + $0x134] sm:$0xf0] }
 0x153   :  { %2099 = vmatpush.bf16.msrb.mxu3 %v3964_v57  ;;  %v5071_v57 = vld [vmem:[%s5219_s7] sm:$0xf] }
 0x154   :  { %v1677_v3 = vperm.slane %v5071_v57, 0 }
 0x155   :  { %v1564_v13 = vpop.f32.mrf.mxu0  ;;  %2564 = vmatpush.bf16.msrb.mxu0 %v4036_v37 }
 0x156   :  { %v1565_v55 = vadd.f32 %v1564_v13, %v1180_v46  ;;  %v4675_v13 = vld [vmem:[#allocation8 + $0xa4] sm:$0xf0]  ;;  %v4160_v46 = vor.u32 %v4691_v44, %v4159_v42  ;;  %v4694_v44 = vld [vmem:[#allocation8 + $0x144] sm:$0xf] }
 0x157   :  { %2100 = vmatpush.bf16.msrb.mxu3 %v3948_v1  ;;  %v4679_v1 = vld [vmem:[#allocation8 + $0xc4] sm:$0xf0]  ;;  %v4096_v21 = vor.u32 %v4675_v13, %v4095_v4  ;;  %v1679_v4 = vperm.slane %v5071_v57, 2  ;;  %v4255_v13 = vld [vmem:[#allocation8 + $0x1e0] sm:$0xf] }
 0x158   :  { %v4112_v2 = vor.u32 %v4679_v1, %v4111_v0  ;;  %v4121_v0 = vld [vmem:[#allocation8 + $0xd8] sm:$0xf0]  ;;  %v4700_v1 = vld [vmem:[#allocation8 + $0x174] sm:$0xf] }
 0x159   :  { %2565 = vmatpush.bf16.msrb.mxu0 %v4028_v40  ;;  %v4671_v40 = vld [vmem:[#allocation8 + $0x84] sm:$0xf0] }
 0x15a   :  { %2523 = vmatpush.bf16.msra.mxu1 %v4112_v2 }
 0x15b   :  { %2101 = vmatpush.bf16.msrb.mxu3 %v3932_v14  ;;  %v4104_v14 = vor.u32 %v4677_v11, %v4103_v10  ;;  %v4263_v10 = vld [vmem:[#allocation8 + $0x1f0] sm:$0xf]  ;;  %v4717_v11 = vld [vmem:[#allocation8 + $0x1f4] sm:$0xf0] }
 0x15d   :  { %v1566_v32 = vpop.f32.mrf.mxu0  ;;  %2566 = vmatpush.bf16.msrb.mxu0 %v4020_v58 }
 0x15e   :  { %2524 = vmatpush.bf16.msra.mxu1 %v4104_v14  ;;  %v4167_v32 = vld [vmem:[#allocation8 + $0x130] sm:$0xf]  ;;  %v4264_v14 = vor.u32 %v4717_v11, %v4263_v10  ;;  %v4690_v10 = vld [vmem:[#allocation8 + $0x124] sm:$0xf]  ;;  %v4161_v11 = vld [vmem:[#allocation8 + $0x128] sm:$0xf0] }
 0x15f   :  { %2102 = vmatpush.bf16.msrb.mxu3 %v3916_v17  ;;  %v4184_v17 = vor.u32 %v4697_v16, %v4183_v15  ;;  %v4168_v35 = vor.u32 %v4693_v33, %v4167_v32  ;;  %v4113_v15 = vld [vmem:[#allocation8 + $0xc8] sm:$0xf0]  ;;  %v4713_v32 = vld [vmem:[#allocation8 + $0x1d4] sm:$0xf0] }
 0x160   :  { %v4193_v16 = vld [vmem:[#allocation8 + $0x168] sm:$0xf0] }
 0x161   :  { %2535 = vmatpush.bf16.msra.mxu2 %v4184_v17 }
 0x162   :  { %2525 = vmatpush.bf16.msra.mxu1 %v4096_v21  ;;  %v1513_v21 = vadd.f32 %v5055_v52, %v1179_v8 }
 0x163   :  { %2103 = vmatpush.bf16.msrb.mxu3 %v3900_v25  ;;  %v5058_v36 = vpop.f32.mrf.mxu1  ;;  %v4725_v25 = vld [vmem:[%s5222_s10 + $0x38] sm:$0xff] }
 0x164   :  { %v1526_v52 = vadd.f32 %v5058_v36, %v1513_v21 }
 0x165   :  { %2536 = vmatpush.bf16.msra.mxu2 %v4176_v26  ;;  %v4696_v26 = vld [vmem:[#allocation8 + $0x154] sm:$0xf] }
 0x166   :  { %2104 = vmatmul.bf16.vlgmr.msrb.gmra.mxu3 %v5029_v6  ;;  %2526 = vmatpush.bf16.msra.mxu1 %v4088_v31  ;;  %v4247_v31 = vld [vmem:[#allocation8 + $0x1d0] sm:$0xf]  ;;  %v4188_v33 = vor.u32 %v4696_v26, %v4185_v30 }
 0x167   :  { %2546 = vmatpush.bf16.msra.mxu3 %v4264_v14 }
 0x169   :  { %2537 = vmatpush.bf16.msra.mxu2 %v4168_v35  ;;  %v4097_v35 = vld [vmem:[#allocation8 + $0xa8] sm:$0xf0] }
 0x16b   :  { %v1527_v6 = vpop.f32.mrf.mxu1 }
 0x16c   :  { %v4684_v6 = vld [vmem:[#allocation8 + $0xf4] sm:$0xf] }
 0x16d   :  { %v4140_v61 = vor.u32 %v4684_v6, %v4137_v47  ;;  %2538 = vmatpush.bf16.msra.mxu2 %v4160_v46  ;;  %v4177_v6 = vld [vmem:[#allocation8 + $0x148] sm:$0xf0] }
 0x16e   :  { %v4180_v47 = vor.u32 %v4694_v44, %v4177_v6  ;;  %v4249_v44 = vld [vmem:[#allocation8 + $0x1d8] sm:$0xf0] }
 0x171   :  { %2539 = vmatpush.bf16.msra.mxu2 %v4152_v50 }
 0x173   :  { %v1577_v59 = vpop.f32.mrf.mxu1 }
 0x174   :  { %v5066_v53 = vadd.f32 %v1577_v59, %v1565_v55  ;;  %v4129_v55 = vld [vmem:[#allocation8 + $0xe8] sm:$0xf0]  ;;  %v4722_v59 = vld [vmem:[%s5222_s10 + $0x20] sm:$0xff] }
 0x175   :  { %v2014_v41 = vpop.f32.mrf.mxu0  ;;  %2540 = vmatpush.bf16.msra.mxu2 %v4144_v63 }
 0x176   :  { %v2015_v12 = vadd.f32 %v2014_v41, %v1677_v3  ;;  %v4080_v41 = vor.u32 %v4671_v40, %v4079_v39  ;;  %v4124_v3 = vor.u32 %v4680_v5, %v4121_v0 }
 0x178   :  { %2527 = vmatpush.bf16.msra.mxu1 %v4080_v41  ;;  %v4718_v41 = vld [vmem:[%s5222_s10] sm:$0xff] }
 0x17b   :  { %v1579_v28 = vpop.f32.mrf.mxu1 }
 0x17c   :  { %2572 = vmatpush.bf16.msrb.mxu1 %v4140_v61  ;;  %v4201_v28 = vld [vmem:[#allocation8 + $0x178] sm:$0xf0]  ;;  %v4239_v61 = vld [vmem:[#allocation8 + $0x1c0] sm:$0xf] }
 0x17d   :  { %v2016_v51 = vpop.f32.mrf.mxu0  ;;  %v4204_v7 = vor.u32 %v4700_v1, %v4201_v28  ;;  %v4231_v28 = vld [vmem:[#allocation8 + $0x1b0] sm:$0xf] }
 0x17e   :  { %v4132_v51 = vor.u32 %v4682_v49, %v4129_v55  ;;  %v4711_v49 = vld [vmem:[#allocation8 + $0x1c4] sm:$0xf0] }
 0x17f   :  { %2585 = vmatpush.bf16.msrb.mxu2 %v4204_v7  ;;  %v4670_v7 = vld [vmem:[#allocation8 + $0x84] sm:$0xf] }
 0x180   :  { %2573 = vmatpush.bf16.msrb.mxu1 %v4132_v51  ;;  %v4240_v51 = vor.u32 %v4711_v49, %v4239_v61  ;;  %v4708_v49 = vld [vmem:[#allocation8 + $0x1b4] sm:$0xf] }
 0x183   :  { %v2027_v18 = vpop.f32.mrf.mxu1 }
 0x184   :  { %v2028_v19 = vadd.f32 %v2027_v18, %v2015_v12  ;;  %2574 = vmatpush.bf16.msrb.mxu1 %v4124_v3  ;;  %v4678_v12 = vld [vmem:[#allocation8 + $0xc4] sm:$0xf]  ;;  %v4709_v3 = vld [vmem:[#allocation8 + $0x1b4] sm:$0xf0] }
 0x185   :  { %v4116_v17 = vor.u32 %v4678_v12, %v4113_v15  ;;  %v4232_v8 = vor.u32 %v4709_v3, %v4231_v28  ;;  %v4732_v28 = vld [vmem:[%s5222_s10 + $0x70] sm:$0xff] }
 0x186   :  { %v2109_v20 = vmax.f32 %v2028_v19, 0.0  ;;  %v5098_v19 = vpop.permute.xlu0 %2645 }
 0x188   :  { %v2113_v27 = vpack.c.bf16 %v2109_v20, %v2109_v20  ;;  %v4715_v20 = vld [vmem:[#allocation8 + $0x1e4] sm:$0xf0]  ;;  %2575 = vmatpush.bf16.msrb.mxu1 %v4116_v17  ;;  %v4223_v17 = vld [vmem:[#allocation8 + $0x1a0] sm:$0xf] }
 0x189   :  { %v5074_v24 = vpop.f32.mrf.mxu2  ;;  %v4256_v22 = vor.u32 %v4715_v20, %v4255_v13  ;;  %v4153_v13 = vld [vmem:[#allocation8 + $0x118] sm:$0xf0] }
 0x18a   :  { %2515 = vmatmul.bf16.vlgmr.msra.gmra.mxu0 %v2113_v27 }
 0x18b   :  { %2928 = vmatpush.bf16.msra.mxu0 %v4725_v25  ;;  %v2029_v37 = vpop.f32.mrf.mxu1  ;;  %v4105_v25 = vld [vmem:[#allocation8 + $0xb8] sm:$0xf0]  ;;  %2547 = vmatpush.bf16.msra.mxu3 %v4256_v22  ;;  %v4215_v22 = vld [vmem:[#allocation8 + $0x190] sm:$0xf] }
 0x18c   :  { %v4108_v29 = vor.u32 %v4676_v23, %v4105_v25  ;;  %v4705_v23 = vld [vmem:[#allocation8 + $0x194] sm:$0xf0]  ;;  %v4686_v25 = vld [vmem:[#allocation8 + $0x104] sm:$0xf] }
 0x18d   :  { %v4216_v26 = vor.u32 %v4705_v23, %v4215_v22 }
 0x18e   :  { %2576 = vmatpush.bf16.msrb.mxu1 %v4108_v29  ;;  %v5110_v55 = vpop.permute.xlu0 %2636 }
 0x18f   :  { %2929 = vmatpush.bf16.msra.mxu0 %v4724_v34  ;;  %v4674_v34 = vld [vmem:[#allocation8 + $0xa4] sm:$0xf] }
 0x190   :  { %v4100_v40 = vor.u32 %v4674_v34, %v4097_v35  ;;  %v4716_v34 = vld [vmem:[#allocation8 + $0x1f4] sm:$0xf]  ;;  %v4265_v35 = vld [vmem:[#allocation8 + $0x1f8] sm:$0xf0] }
 0x191   :  { %v1540_v58 = vpop.f32.mrf.mxu2 }
 0x192   :  { %v1539_v58 = vadd.f32 %v5074_v24, %v1526_v52  ;;  %2577 = vmatpush.bf16.msrb.mxu1 %v4100_v40  ;;  %v4257_v52 = vld [vmem:[#allocation8 + $0x1e8] sm:$0xf0] }
 0x193   :  { %2930 = vmatpush.bf16.msra.mxu0 %v4723_v38  ;;  %v4248_v38 = vor.u32 %v4713_v32, %v4247_v31  ;;  %v4207_v31 = vld [vmem:[#allocation8 + $0x180] sm:$0xf]  ;;  %v4703_v32 = vld [vmem:[#allocation8 + $0x184] sm:$0xf0] }
 0x195   :  { %v2066_v37 = vpop.f32.mrf.mxu0  ;;  %2548 = vmatpush.bf16.msra.mxu3 %v4248_v38  ;;  %v4714_v38 = vld [vmem:[#allocation8 + $0x1e4] sm:$0xf] }
 0x196   :  { %v2067_v39 = vadd.f32 %v2066_v37, %v1679_v4  ;;  %v4268_v37 = vor.u32 %v4716_v34, %v4265_v35  ;;  %v4739_v34 = vld [vmem:[%s5222_s10 + $0xa8] sm:$0xff] }
 0x197   :  { %2931 = vmatpush.bf16.msra.mxu0 %v4722_v59  ;;  %v4672_v59 = vld [vmem:[#allocation8 + $0x94] sm:$0xf] }
 0x199   :  { %v1590_v62 = vpop.f32.mrf.mxu2  ;;  %2549 = vmatpush.bf16.msra.mxu3 %v4240_v51  ;;  %v4233_v51 = vld [vmem:[#allocation8 + $0x1b8] sm:$0xf0] }
 0x19a   :  { %v5092_v2 = vadd.f32 %v1590_v62, %v5066_v53  ;;  %2567 = vmatmul.bf16.vlgmr.msrb.gmra.mxu0 %v2113_v27  ;;  %v4698_v53 = vld [vmem:[#allocation8 + $0x164] sm:$0xf]  ;;  %v4169_v62 = vld [vmem:[#allocation8 + $0x138] sm:$0xf0] }
 0x19b   :  { %2932 = vmatpush.bf16.msra.mxu0 %v4721_v54  ;;  %v4196_v18 = vor.u32 %v4698_v53, %v4193_v16  ;;  %v4089_v54 = vld [vmem:[#allocation8 + $0x98] sm:$0xf0]  ;;  %v4172_v63 = vor.u32 %v4692_v56, %v4169_v62  ;;  %v4164_v53 = vor.u32 %v4690_v10, %v4161_v11 }
 0x19c   :  { %v4092_v5 = vor.u32 %v4672_v59, %v4089_v54  ;;  %v4236_v54 = vor.u32 %v4708_v49, %v4233_v51  ;;  %v4733_v56 = vld [vmem:[%s5222_s10 + $0x78] sm:$0xff]  ;;  %v4730_v11 = vld [vmem:[%s5222_s10 + $0x60] sm:$0xff] }
 0x19d   :  { %2586 = vmatpush.bf16.msrb.mxu2 %v4196_v18  ;;  %v2068_v0 = vpop.f32.mrf.mxu0  ;;  %2550 = vmatpush.bf16.msra.mxu3 %v4232_v8  ;;  %v4707_v18 = vld [vmem:[#allocation8 + $0x1a4] sm:$0xf0]  ;;  %v4209_v8 = vld [vmem:[#allocation8 + $0x188] sm:$0xf0] }
 0x19e   :  { %2578 = vmatpush.bf16.msrb.mxu1 %v4092_v5  ;;  %v4224_v4 = vor.u32 %v4707_v18, %v4223_v17  ;;  %v4217_v0 = vld [vmem:[#allocation8 + $0x198] sm:$0xf0]  ;;  %v4727_v17 = vld [vmem:[%s5222_s10 + $0x48] sm:$0xff] }
 0x19f   :  { %2933 = vmatpush.bf16.msra.mxu0 %v4720_v9  ;;  %v4081_v9 = vld [vmem:[#allocation8 + $0x88] sm:$0xf0] }
 0x1a0   :  { %v4084_v15 = vor.u32 %v4670_v7, %v4081_v9  ;;  %v4702_v7 = vld [vmem:[#allocation8 + $0x184] sm:$0xf] }
 0x1a1   :  { %v1592_v27 = vpop.f32.mrf.mxu2  ;;  %2587 = vmatpush.bf16.msrb.mxu2 %v4188_v33  ;;  %2551 = vmatpush.bf16.msra.mxu3 %v4224_v4  ;;  %v4208_v33 = vor.u32 %v4703_v32, %v4207_v31  ;;  %v4731_v9 = vld [vmem:[%s5222_s10 + $0x68] sm:$0xff]  ;;  %v4212_v10 = vor.u32 %v4702_v7, %v4209_v8  ;;  %v4741_v31 = vld [vmem:[%s5222_s10 + $0xb8] sm:$0xff] }
 0x1a2   :  { %2579 = vmatpush.bf16.msrb.mxu1 %v4084_v15  ;;  %v4145_v27 = vld [vmem:[#allocation8 + $0x108] sm:$0xf0] }
 0x1a3   :  { %2934 = vmatpush.bf16.msra.mxu0 %v4719_v45  ;;  %v4688_v45 = vld [vmem:[#allocation8 + $0x114] sm:$0xf]  ;;  %v4148_v29 = vor.u32 %v4686_v25, %v4145_v27 }
 0x1a4   :  { %v4156_v21 = vor.u32 %v4688_v45, %v4153_v13  ;;  %v4728_v15 = vld [vmem:[%s5222_s10 + $0x50] sm:$0xff] }
 0x1a5   :  { %v2079_v42 = vpop.f32.mrf.mxu1  ;;  %2588 = vmatpush.bf16.msrb.mxu2 %v4180_v47  ;;  %2552 = vmatpush.bf16.msra.mxu3 %v4216_v26  ;;  %v4241_v47 = vld [vmem:[#allocation8 + $0x1c8] sm:$0xf0] }
 0x1a6   :  { %v2080_v46 = vadd.f32 %v2079_v42, %v2067_v39  ;;  %v4260_v39 = vor.u32 %v4714_v38, %v4257_v52  ;;  %v4712_v42 = vld [vmem:[#allocation8 + $0x1d4] sm:$0xf] }
 0x1a7   :  { %2935 = vmatpush.bf16.msra.mxu0 %v4718_v41  ;;  %v1678_v41 = vperm.slane %v5071_v57, 1  ;;  %v4252_v6 = vor.u32 %v4712_v42, %v4249_v44  ;;  %v4749_v38 = vld [vmem:[%s5222_s10 + $0xf8] sm:$0xff]  ;;  %v2653_v44 = vpop.permute.xlu1 %2652 }
 0x1a8   :  { %v2111_v36 = vmax.f32 %v2080_v46, 0.0  ;;  %v4710_v46 = vld [vmem:[#allocation8 + $0x1c4] sm:$0xf]  ;;  %v4737_v52 = vld [vmem:[%s5222_s10 + $0x98] sm:$0xff]  ;;  %v2655_v49 = vperm.slane %v2653_v44, 0 }
 0x1a9   :  { %v1551_v43 = vpop.f32.mrf.mxu3  ;;  %v5112_v50 = vpop.f32.mrf.mxu2  ;;  %2589 = vmatpush.bf16.msrb.mxu2 %v4172_v63  ;;  %2553 = vmatpush.bf16.msra.mxu3 %v4208_v33  ;;  %v4704_v63 = vld [vmem:[#allocation8 + $0x194] sm:$0xf] }
 0x1aa   :  { %v1552_v48 = vadd.f32 %v1551_v43, %v1539_v58  ;;  %v2115_v60 = vpack.c.bf16 %v2111_v36, %v2111_v36  ;;  %v2041_v58 = vadd.f32 %v5112_v50, %v1678_v41  ;;  %v4225_v50 = vld [vmem:[#allocation8 + $0x1a8] sm:$0xf0]  ;;  %v4220_v3 = vor.u32 %v4704_v63, %v4217_v0  ;;  %v4742_v0 = vld [vmem:[%s5222_s10 + $0xc0] sm:$0xff] }
 0x1ab   :  { %v4740_v33 = vld [vmem:[%s5222_s10 + $0xb0] sm:$0xff] }
 0x1ac   :  { %v1607_v24 = vmax.f32 %v1552_v48, 0.0  ;;  %2541 = vmatmul.bf16.vlgmr.msra.gmra.mxu2 %v2115_v60  ;;  %v4244_v48 = vor.u32 %v4710_v46, %v4241_v47  ;;  %v4748_v41 = vld [vmem:[%s5222_s10 + $0xf0] sm:$0xff]  ;;  %v4734_v46 = vld [vmem:[%s5222_s10 + $0x80] sm:$0xff] }
 0x1ad   :  { %v2081_v12 = vpop.f32.mrf.mxu1  ;;  %2590 = vmatpush.bf16.msrb.mxu2 %v4164_v53  ;;  %2598 = vmatpush.bf16.msrb.mxu3 %v4268_v37  ;;  %v4738_v37 = vld [vmem:[%s5222_s10 + $0xa0] sm:$0xff] }
 0x1ae   :  { %v2639_v1 = vmul.f32 %v5110_v55, %v1607_v24  ;;  %v4729_v12 = vld [vmem:[%s5222_s10 + $0x58] sm:$0xff]  ;;  %v4746_v47 = vld [vmem:[%s5222_s10 + $0xe0] sm:$0xff] }
 0x1b0   :  { %v2665_v14 = vpack.c.bf16 %v2639_v1, %v2639_v1 }
 0x1b1   :  { %v1553_v16 = vpop.f32.mrf.mxu3  ;;  %v2042_v20 = vpop.f32.mrf.mxu2  ;;  %2591 = vmatpush.bf16.msrb.mxu2 %v4156_v21  ;;  %2599 = vmatpush.bf16.msrb.mxu3 %v4260_v39 }
 0x1b2   :  { %2936 = vmatmul.bf16.vlgmr.msra.gmra.mxu0 %v2665_v14  ;;  %v1680_v14 = vperm.slane %v5071_v57, 3  ;;  %v4726_v57 = vld [vmem:[%s5222_s10 + $0x40] sm:$0xff] }
 0x1b5   :  { %2592 = vmatpush.bf16.msrb.mxu2 %v4148_v29  ;;  %2600 = vmatpush.bf16.msrb.mxu3 %v4252_v6  ;;  %v4735_v6 = vld [vmem:[%s5222_s10 + $0x88] sm:$0xff] }
 0x1b9   :  { %v5115_v30 = vpop.f32.mrf.mxu3  ;;  %2601 = vmatpush.bf16.msrb.mxu3 %v4244_v48  ;;  %2954 = vmatpush.bf16.msra.mxu2 %v4741_v31  ;;  %v4745_v48 = vld [vmem:[%s5222_s10 + $0xd8] sm:$0xff] }
 0x1ba   :  { %v1604_v53 = vadd.f32 %v5115_v30, %v5092_v2 }
 0x1bc   :  { %2593 = vmatmul.bf16.vlgmr.msrb.gmra.mxu2 %v2115_v60  ;;  %v4706_v60 = vld [vmem:[#allocation8 + $0x1a4] sm:$0xf]  ;;  %v1608_v18 = vmax.f32 %v1604_v53, 0.0 }
 0x1bd   :  { %2602 = vmatpush.bf16.msrb.mxu3 %v4236_v54  ;;  %v4228_v62 = vor.u32 %v4706_v60, %v4225_v50  ;;  %2955 = vmatpush.bf16.msra.mxu2 %v4740_v33  ;;  %v2657_v54 = vld [vmem:[%s5224_s12] sm:$0x1] }
 0x1be   :  { %v2640_v20 = vmul.f32 %v5110_v55, %v1608_v18 }
 0x1c0   :  { %v2666_v2 = vpack.c.bf16 %v2640_v20, %v2640_v20 }
 0x1c1   :  { %v1605_v40 = vpop.f32.mrf.mxu3  ;;  %2603 = vmatpush.bf16.msrb.mxu3 %v4228_v62  ;;  %2956 = vmatpush.bf16.msra.mxu2 %v4739_v34 }
 0x1c2   :  { %v4736_v40 = vld [vmem:[%s5222_s10 + $0x90] sm:$0xff] }
 0x1c5   :  { %2604 = vmatpush.bf16.msrb.mxu3 %v4220_v3  ;;  %2957 = vmatpush.bf16.msra.mxu2 %v4738_v37 }
 0x1c9   :  { %v2092_v43 = vpop.f32.mrf.mxu2  ;;  %v2053_v36 = vpop.f32.mrf.mxu3  ;;  %2605 = vmatpush.bf16.msrb.mxu3 %v4212_v10  ;;  %2958 = vmatpush.bf16.msra.mxu2 %v4737_v52 }
 0x1ca   :  { %v2054_v61 = vadd.f32 %v2053_v36, %v2041_v58  ;;  %v2093_v16 = vadd.f32 %v2092_v43, %v1680_v14  ;;  %v4747_v58 = vld [vmem:[%s5222_s10 + $0xe8] sm:$0xff]  ;;  %v2660_v36 = vpop.permute.xlu1 %2659 }
 0x1cb   :  { %v2662_v51 = vperm.slane %v2660_v36, 0 }
 0x1cc   :  { %v2110_v59 = vmax.f32 %v2054_v61, 0.0  ;;  %v4744_v61 = vld [vmem:[%s5222_s10 + $0xd0] sm:$0xff] }
 0x1cd   :  { %2959 = vmatpush.bf16.msra.mxu2 %v4736_v40  ;;  %v2663_v50 = vmul.f32 %v2662_v51, %v2657_v54 }
 0x1ce   :  { %v2114_v24 = vpack.c.bf16 %v2110_v59, %v2110_v59  ;;  %v2650_v59 = vld [vmem:[%s5223_s11] sm:$0x1] }
 0x1cf   :  { %v2656_v60 = vmul.f32 %v2655_v49, %v2650_v59 }
 0x1d0   :  { %2528 = vmatmul.bf16.vlgmr.msra.gmra.mxu1 %v2114_v24 }
 0x1d1   :  { %v2094_v5 = vpop.f32.mrf.mxu2  ;;  %2941 = vmatpush.bf16.msra.mxu1 %v4733_v56  ;;  %v2055_v1 = vpop.f32.mrf.mxu3  ;;  %2960 = vmatpush.bf16.msra.mxu2 %v4735_v6  ;;  %v2664_v63 = vadd.f32 %v2663_v50, %v2656_v60 }
 0x1d2   :  { %v4743_v5 = vld [vmem:[%s5222_s10 + $0xc8] sm:$0xff] }
 0x1d3   :  { %v2734_v3 = vperm.slane %v2664_v63, 0 }
 0x1d5   :  { %2942 = vmatpush.bf16.msra.mxu1 %v4732_v28  ;;  %2961 = vmatpush.bf16.msra.mxu2 %v4734_v46 }
 0x1d9   :  { %2943 = vmatpush.bf16.msra.mxu1 %v4731_v9 }
 0x1dd   :  { %2944 = vmatpush.bf16.msra.mxu1 %v4730_v11 }
 0x1e0   :  { %2580 = vmatmul.bf16.vlgmr.msrb.gmra.mxu1 %v2114_v24  ;;  %v2181_v24 = vld [vmem:[%s5221_s9] sm:$0x3] }
 0x1e1   :  { %2945 = vmatpush.bf16.msra.mxu1 %v4729_v12  ;;  %v2183_v62 = vperm.slane %v2181_v24, 0  ;;  %v2184_v53 = vperm.slane %v2181_v24, 1 }
 0x1e5   :  { %2946 = vmatpush.bf16.msra.mxu1 %v4728_v15 }
 0x1e9   :  { %v2105_v45 = vpop.f32.mrf.mxu3  ;;  %2947 = vmatpush.bf16.msra.mxu1 %v4727_v17 }
 0x1ea   :  { %v2106_v4 = vadd.f32 %v2105_v45, %v2093_v16 }
 0x1ec   :  { %v2112_v13 = vmax.f32 %v2106_v4, 0.0 }
 0x1ed   :  { %2948 = vmatpush.bf16.msra.mxu1 %v4726_v57 }
 0x1ee   :  { %v2116_v21 = vpack.c.bf16 %v2112_v13, %v2112_v13 }
 0x1f0   :  { %2554 = vmatmul.bf16.vlgmr.msra.gmra.mxu3 %v2116_v21  ;;  %2949 = vmatmul.bf16.vlgmr.msra.gmra.mxu1 %v2666_v2 }
 0x1f1   :  { %v2107_v22 = vpop.f32.mrf.mxu3  ;;  %2967 = vmatpush.bf16.msra.mxu3 %v4749_v38 }
 0x1f5   :  { %2968 = vmatpush.bf16.msra.mxu3 %v4748_v41 }
 0x1f9   :  { %2969 = vmatpush.bf16.msra.mxu3 %v4747_v58 }
 0x1fd   :  { %2970 = vmatpush.bf16.msra.mxu3 %v4746_v47 }
 0x200   :  { %2606 = vmatmul.bf16.vlgmr.msrb.gmra.mxu3 %v2116_v21 }
 0x201   :  { %2971 = vmatpush.bf16.msra.mxu3 %v4745_v48 }
 0x205   :  { %2972 = vmatpush.bf16.msra.mxu3 %v4744_v61 }
 0x207   :  { %v2516_v23 = vpop.f32.mrf.mxu0 }
 0x208   :  { %v2517_v28 = vadd.f32 %v2516_v23, %v2183_v62 }
 0x209   :  { %2973 = vmatpush.bf16.msra.mxu3 %v4743_v5 }
 0x20d   :  { %2974 = vmatpush.bf16.msra.mxu3 %v4742_v0 }
 0x20f   :  { %v2518_v25 = vpop.f32.mrf.mxu0 }
 0x217   :  { %v5147_v26 = vpop.f32.mrf.mxu0 }
 0x218   :  { %v2569_v4 = vadd.f32 %v5147_v26, %v2184_v53 }
 0x21f   :  { %v2570_v27 = vpop.f32.mrf.mxu0 }
 0x22f   :  { %v2937_v29 = vpop.f32.mrf.mxu0  ;;  %v2542_v30 = vpop.f32.mrf.mxu2 }
 0x230   :  { %v2938_v8 = vadd.f32 %v2937_v29, %v2734_v3 }
 0x237   :  { %v2939_v32 = vpop.f32.mrf.mxu0  ;;  %v2544_v55 = vpop.f32.mrf.mxu2 }
 0x23f   :  { %v2594_v35 = vpop.f32.mrf.mxu2 }
 0x247   :  { %v2596_v39 = vpop.f32.mrf.mxu2 }
 0x24d   :  { %v2529_v42 = vpop.f32.mrf.mxu1 }
 0x24e   :  { %v2530_v7 = vadd.f32 %v2529_v42, %v2517_v28 }
 0x250   :  { %v2543_v11 = vadd.f32 %v2542_v30, %v2530_v7 }
 0x255   :  { %v2531_v43 = vpop.f32.mrf.mxu1 }
 0x25d   :  { %v2581_v56 = vpop.f32.mrf.mxu1 }
 0x25e   :  { %v2582_v13 = vadd.f32 %v2581_v56, %v2569_v4 }
 0x260   :  { %v2595_v57 = vadd.f32 %v2594_v35, %v2582_v13 }
 0x265   :  { %v2583_v1 = vpop.f32.mrf.mxu1 }
 0x26d   :  { %v2950_v9 = vpop.f32.mrf.mxu1 }
 0x26e   :  { %v2951_v10 = vadd.f32 %v2950_v9, %v2938_v8 }
 0x273   :  { %v2555_v12 = vpop.f32.mrf.mxu3 }
 0x274   :  { %v2556_v14 = vadd.f32 %v2555_v12, %v2543_v11 }
 0x275   :  { %v2952_v17 = vpop.f32.mrf.mxu1 }
 0x276   :  { %v2611_v15 = vmax.f32 %v2556_v14, 0.0 }
 0x278   :  { %v2648_v16 = vmul.f32 %v5098_v19, %v2611_v15 }
 0x27a   :  { %v2667_v18 = vpack.c.bf16 %v2648_v16, %v2648_v16 }
 0x27b   :  { %v2557_v45 = vpop.f32.mrf.mxu3 }
 0x27c   :  { %2962 = vmatmul.bf16.vlgmr.msra.gmra.mxu2 %v2667_v18 }
 0x283   :  { %v2607_v20 = vpop.f32.mrf.mxu3 }
 0x284   :  { %v2608_v21 = vadd.f32 %v2607_v20, %v2595_v57 }
 0x286   :  { %v2612_v2 = vmax.f32 %v2608_v21, 0.0 }
 0x288   :  { %v2649_v22 = vmul.f32 %v5098_v19, %v2612_v2 }
 0x28a   :  { %v2668_v23 = vpack.c.bf16 %v2649_v22, %v2649_v22 }
 0x28b   :  { %v2609_v25 = vpop.f32.mrf.mxu3 }
 0x28c   :  { %2975 = vmatmul.bf16.vlgmr.msra.gmra.mxu3 %v2668_v23 }
 0x2ff   :  { %v2963_v27 = vpop.f32.mrf.mxu2 }
 0x300   :  { %v2964_v30 = vadd.f32 %v2963_v27, %v2951_v10 }
 0x307   :  { %v2965_v29 = vpop.f32.mrf.mxu2 }
 0x30f   :  { %v2976_v31 = vpop.f32.mrf.mxu3 }
 0x310   :  { %v2977_v32 = vadd.f32 %v2976_v31, %v2964_v30 }
 0x312   :  { %2981 = vst.msk [vmem:[%s5225_s13] sm:$0xff] %vm2980_vm4, %v2977_v32 }
 0x317   :  { %v2978_v26 = vpop.f32.mrf.mxu3 }
 0x318   :  { %2986 = vsyncpa [#allocation4], 1 }
 0x319   :  { %2987 = vsyncpa [#allocation6], 1 }
 0x31a   :  { %2988 = vsyncpa [#allocation9], 1 }

</bundles_post_ra>
